<compile_context>
chip_gen: v7x
topology: tpu7x:2x2x1
jax: 0.10.0
libtpu: 0.0.40
codegen_flags: <defaults>
</compile_context>

<pallas_src>
import functools

import jax
import jax.numpy as jnp
import numpy as np
from jax.experimental import pallas as pl
from jax.experimental.pallas import tpu as pltpu

_VMEM = pl.BlockSpec(memory_space=pltpu.MemorySpace.VMEM)


# ----------------------------- fused Pallas kernel -------------------------- #
def _build_fused_kernel(T, L, H, in_dims):
    """Fused decoder step: L x attention + L-layer LSTM over T steps + pred."""

    def kernel(xseq_ref, h0_ref, c0_ref, enc_ref,
               wax_ref, wah_ref, wac_ref, ba_ref,
               wch_ref, wca_ref, bc_ref,
               wih_ref, whh_ref, bl_ref, pw_ref, pb_ref,
               pred_ref, hn_ref, cn_ref, aw_ref,
               cur_ref):
        out0 = xseq_ref[0]                                    # (B, F)

        for i in range(L):                                    # static unroll over layers
            h_i = h0_ref[i]                                   # (B, H)
            c_i = c0_ref[i]                                   # (B, H)

            # ---- attention: Linear(cat[out0, h, c]) as 3 split dots -> softmax ----
            logits = (jnp.dot(out0, wax_ref[i], preferred_element_type=jnp.float32)
                      + jnp.dot(h_i, wah_ref[i], preferred_element_type=jnp.float32)
                      + jnp.dot(c_i, wac_ref[i], preferred_element_type=jnp.float32)
                      + ba_ref[i])                            # (B, Lmax)
            m = jnp.max(logits, axis=1, keepdims=True)
            e = jnp.exp(logits - m)
            denom = jnp.sum(e, axis=1, keepdims=True)
            aw = e * pl.reciprocal(denom, approx=False)       # reciprocal on EUP
            aw_ref[i] = aw

            # attns_applied = bmm(aw[:,None,:], enc_i)[:, 0, :]  -> (B, H)
            applied = jnp.sum(aw[:, :, None] * enc_ref[i], axis=1)

            # ---- attn_combine: attention half computed once and reused ----
            a_part = (jnp.dot(applied, wca_ref[i], preferred_element_type=jnp.float32)
                      + bc_ref[i])
            h_dec = jnp.dot(h_i, wch_ref[i], preferred_element_type=jnp.float32) + a_part
            c_dec = jnp.dot(c_i, wch_ref[i], preferred_element_type=jnp.float32) + a_part

            # ---- LSTM layer i over T steps (PyTorch gate order i, f, g, o) ----
            wih_i = wih_ref[i]                                # (in_max, 4H)
            if in_dims[i] != wih_i.shape[0]:                  # static; no-op here
                wih_i = wih_i[:in_dims[i], :]
            whh_i = whh_ref[i]                                # (H, 4H)
            b_i = bl_ref[i]                                   # (1, 4H) = 128 lanes
            first_layer = (i == 0)

            def step(t, carry):
                h, c = carry
                x_t = xseq_ref[t] if first_layer else cur_ref[t]
                gates = (jnp.dot(x_t, wih_i, preferred_element_type=jnp.float32)
                         + jnp.dot(h, whh_i, preferred_element_type=jnp.float32)
                         + b_i)                               # (B, 4H)
                ig = jax.nn.sigmoid(gates[:, 0:H])
                fg = jax.nn.sigmoid(gates[:, H:2 * H])
                gg = jnp.tanh(gates[:, 2 * H:3 * H])
                og = jax.nn.sigmoid(gates[:, 3 * H:4 * H])
                c_new = fg * c + ig * gg
                h_new = og * jnp.tanh(c_new)
                cur_ref[t] = h_new                            # layer output, stays in VMEM
                return h_new, c_new

            h_fin, c_fin = jax.lax.fori_loop(0, T, step, (h_dec, c_dec))
            hn_ref[i] = h_fin
            cn_ref[i] = c_fin
            # TODO(synk): inter-layer nn.Dropout is identity in eval mode; omitted.

        # ---- prediction head on timestep 0 of the last layer's output ----
        pred = (jnp.dot(cur_ref[0], pw_ref[...], preferred_element_type=jnp.float32)
                + pb_ref[...])
        pred_ref[...] = jnp.maximum(pred, 0.0)

    return kernel


def _fused_decoder_call(x_seq, h0, c0, enc, wax, wah, wac, ba, wch, wca, bc,
                        wih, whh, bl, pw, pb, in_dims):
    T, B, _ = x_seq.shape
    L, _, H = h0.shape
    Lmax = ba.shape[2]
    O = pw.shape[1]
    kernel = _build_fused_kernel(T, L, H, tuple(in_dims))
    return pl.pallas_call(
        kernel,
        out_shape=(jax.ShapeDtypeStruct((B, O), jnp.float32),
                   jax.ShapeDtypeStruct((L, B, H), jnp.float32),
                   jax.ShapeDtypeStruct((L, B, H), jnp.float32),
                   jax.ShapeDtypeStruct((L, B, Lmax), jnp.float32)),
        in_specs=[_VMEM] * 16,
        out_specs=(_VMEM, _VMEM, _VMEM, _VMEM),
        scratch_shapes=[pltpu.VMEM((T, B, H), jnp.float32)],
    )(x_seq, h0, c0, enc, wax, wah, wac, ba, wch, wca, bc, wih, whh, bl, pw, pb)


# ------------------------------ jnp reference ------------------------------- #
def _fused_decoder_ref(x_seq, h0, c0, enc, wax, wah, wac, ba, wch, wca, bc,
                       wih, whh, bl, pw, pb, in_dims):
    T = x_seq.shape[0]
    L, _, H = h0.shape
    out0 = x_seq[0]
    aw_l, hd_l, cd_l = [], [], []
    for i in range(L):
        logits = out0 @ wax[i] + h0[i] @ wah[i] + c0[i] @ wac[i] + ba[i]
        awi = jax.nn.softmax(logits, axis=1)
        applied = jnp.einsum('bt,bth->bh', awi, enc[i])
        hd = h0[i] @ wch[i] + applied @ wca[i] + bc[i]
        cd = c0[i] @ wch[i] + applied @ wca[i] + bc[i]
        aw_l.append(awi); hd_l.append(hd); cd_l.append(cd)
    cur = x_seq
    hn_l, cn_l = [], []
    for i in range(L):
        h, c = hd_l[i], cd_l[i]
        w_i = wih[i][:in_dims[i]]
        outs = []
        for t in range(T):
            gates = cur[t] @ w_i + h @ whh[i] + bl[i]
            ig = jax.nn.sigmoid(gates[:, 0:H])
            fg = jax.nn.sigmoid(gates[:, H:2 * H])
            gg = jnp.tanh(gates[:, 2 * H:3 * H])
            og = jax.nn.sigmoid(gates[:, 3 * H:4 * H])
            c = fg * c + ig * gg
            h = og * jnp.tanh(c)
            outs.append(h)
        cur = jnp.stack(outs, axis=0)
        hn_l.append(h); cn_l.append(c)
    pred = jnp.maximum(cur[0] @ pw + pb, 0.0)
    return pred, jnp.stack(hn_l), jnp.stack(cn_l), jnp.stack(aw_l)


# ------------------------------ forward (glue) ------------------------------ #
@functools.partial(jax.jit, static_argnames=('use_pallas',))
def attn_decoder_forward(params, x, x_emb, x_cal_emb, hidden, encoder_outputs,
                         use_pallas=True):
    L = len(params['attn_w'])

    # (B, T, *) -> (T, B, *)
    x = jnp.transpose(x, (1, 0, 2))
    xe = jnp.transpose(x_emb, (1, 0, 2))
    xc = jnp.transpose(x_cal_emb, (1, 0, 2))

    # embedding lookups (gather) -- plain-JAX glue
    embs = [tbl[xe[:, :, i]] for i, tbl in enumerate(params['emb_tables'])]
    cal = [params['cal_table'][xc[:, :, 0]], params['cal_table'][xc[:, :, 1]]]
    x_seq = jnp.concatenate([x] + embs + cal, axis=2)          # (T, B, input_size)
    F = x_seq.shape[2]

    h_in, c_in = hidden                                        # each (L, B, H, 1)
    h0 = h_in[..., 0]                                          # view(-1, num_hidden)
    c0 = c_in[..., 0]
    H = h0.shape[2]

    # one stack + transpose for all layers -> (L, B, Lmax, H)
    enc = jnp.transpose(jnp.stack(encoder_outputs, axis=0), (0, 2, 1, 3))

    # stack + pre-split per-layer weights once, in XLA glue (no in-kernel concat)
    wa = jnp.stack(params['attn_w'])                           # (L, F+2H, Lmax)
    wax, wah, wac = wa[:, :F], wa[:, F:F + H], wa[:, F + H:]
    ba = jnp.stack(params['attn_b'])                           # (L, 1, Lmax)
    wc = jnp.stack(params['comb_w'])                           # (L, 2H, H)
    wch, wca = wc[:, :H], wc[:, H:]
    bc = jnp.stack(params['comb_b'])                           # (L, 1, H)
    in_dims = tuple(w.shape[0] for w in params['lstm_wih'])
    in_max = max(in_dims)
    wih = jnp.stack([jnp.pad(w, ((0, in_max - w.shape[0]), (0, 0)))
                     for w in params['lstm_wih']])             # (L, in_max, 4H)
    whh = jnp.stack(params['lstm_whh'])                        # (L, H, 4H)
    bl = jnp.stack(params['lstm_b'])                           # (L, 1, 4H)
    pw, pb = params['pred_w'], params['pred_b']

    fn = _fused_decoder_call if use_pallas else _fused_decoder_ref
    pred, hn, cn, aw = fn(x_seq, h0, c0, enc, wax, wah, wac, ba, wch, wca, bc,
                          wih, whh, bl, pw, pb, in_dims)

    hidden_out = [hn[..., None], cn[..., None]]                # h_n.permute(1, 2, 0)
    attn_weights = [aw[i] for i in range(L)]
    return pred, hidden_out, attn_weights


# ----------------------------------- main ----------------------------------- #
if __name__ == "__main__":
    B, T = 4, 1
    H, L = 32, 2
    MAXLEN = 8
    EMB_SIZES = [(5, 4), (7, 4)]
    CAL = (12, 4)
    F_CONT = 16
    INPUT_SIZE = F_CONT + sum(d for _, d in EMB_SIZES) + 2 * CAL[1]   # 32
    OUT_SIZE = 8

    keys = iter(jax.random.split(jax.random.PRNGKey(0), 64))
    nk = lambda: next(keys)

    def lin_init(key, fan_in, shape):
        s = 1.0 / np.sqrt(fan_in)
        return jax.random.uniform(key, shape, jnp.float32, -s, s)

    params = {}
    params['emb_tables'] = [jax.random.normal(nk(), (n, d), jnp.float32)
                            for n, d in EMB_SIZES]
    params['cal_table'] = jax.random.normal(nk(), CAL, jnp.float32)
    attn_in = INPUT_SIZE + 2 * H
    params['attn_w'] = [lin_init(nk(), attn_in, (attn_in, MAXLEN)) for _ in range(L)]
    params['attn_b'] = [lin_init(nk(), attn_in, (1, MAXLEN)) for _ in range(L)]
    params['comb_w'] = [lin_init(nk(), 2 * H, (2 * H, H)) for _ in range(L)]
    params['comb_b'] = [lin_init(nk(), 2 * H, (1, H)) for _ in range(L)]
    rnn_in = [INPUT_SIZE] + [H] * (L - 1)
    params['lstm_wih'] = [lin_init(nk(), H, (rnn_in[i], 4 * H)) for i in range(L)]
    params['lstm_whh'] = [lin_init(nk(), H, (H, 4 * H)) for i in range(L)]
    params['lstm_b'] = [lin_init(nk(), H, (1, 4 * H)) + lin_init(nk(), H, (1, 4 * H))
                        for _ in range(L)]     # b_ih + b_hh folded together
    params['pred_w'] = lin_init(nk(), H, (H, OUT_SIZE))
    params['pred_b'] = lin_init(nk(), H, (1, OUT_SIZE))

    # deterministic example inputs
    x = jax.random.normal(nk(), (B, T, F_CONT), jnp.float32)
    x_emb = jnp.stack([jax.random.randint(nk(), (B, T), 0, n) for n, _ in EMB_SIZES],
                      axis=2)                                # (B, T, 2) int32
    x_cal_emb = jax.random.randint(nk(), (B, T, 2), 0, CAL[0])
    h0 = jax.random.normal(nk(), (L, B, H, 1), jnp.float32)  # hidden[0]
    c0 = jax.random.normal(nk(), (L, B, H, 1), jnp.float32)  # hidden[1]
    enc_outputs = [jax.random.normal(nk(), (MAXLEN, B, H), jnp.float32)
                   for _ in range(L)]

    out, hidden_out, attn_w = attn_decoder_forward(
        params, x, x_emb, x_cal_emb, (h0, c0), enc_outputs, use_pallas=True)
    jax.block_until_ready(out)
    jax.block_until_ready(hidden_out)

    # pure-JAX reference check of the fused Pallas kernel
    ref_out, ref_hidden, ref_aw = attn_decoder_forward(
        params, x, x_emb, x_cal_emb, (h0, c0), enc_outputs, use_pallas=False)
    np.testing.assert_allclose(np.asarray(out), np.asarray(ref_out),
                               rtol=1e-4, atol=1e-4)
    np.testing.assert_allclose(np.asarray(hidden_out[0]), np.asarray(ref_hidden[0]),
                               rtol=1e-4, atol=1e-4)
    np.testing.assert_allclose(np.asarray(hidden_out[1]), np.asarray(ref_hidden[1]),
                               rtol=1e-4, atol=1e-4)
    for a, r in zip(attn_w, ref_aw):
        np.testing.assert_allclose(np.asarray(a), np.asarray(r),
                                   rtol=1e-4, atol=1e-4)

    print("KERNEL_OK")
</pallas_src>

<mosaic_0001>
module attributes {stable_mosaic.version = 11 : i64} {
  func.func @kernel(%arg0: memref<1x4x32xf32, #tpu.memory_space<vmem>>, %arg1: memref<2x4x32xf32, #tpu.memory_space<vmem>>, %arg2: memref<2x4x32xf32, #tpu.memory_space<vmem>>, %arg3: memref<2x4x8x32xf32, #tpu.memory_space<vmem>>, %arg4: memref<2x32x8xf32, #tpu.memory_space<vmem>>, %arg5: memref<2x32x8xf32, #tpu.memory_space<vmem>>, %arg6: memref<2x32x8xf32, #tpu.memory_space<vmem>>, %arg7: memref<2x1x8xf32, #tpu.memory_space<vmem>>, %arg8: memref<2x32x32xf32, #tpu.memory_space<vmem>>, %arg9: memref<2x32x32xf32, #tpu.memory_space<vmem>>, %arg10: memref<2x1x32xf32, #tpu.memory_space<vmem>>, %arg11: memref<2x32x128xf32, #tpu.memory_space<vmem>>, %arg12: memref<2x32x128xf32, #tpu.memory_space<vmem>>, %arg13: memref<2x1x128xf32, #tpu.memory_space<vmem>>, %arg14: memref<32x8xf32, #tpu.memory_space<vmem>>, %arg15: memref<1x8xf32, #tpu.memory_space<vmem>>, %arg16: memref<4x8xf32, #tpu.memory_space<vmem>>, %arg17: memref<2x4x32xf32, #tpu.memory_space<vmem>>, %arg18: memref<2x4x32xf32, #tpu.memory_space<vmem>>, %arg19: memref<2x4x8xf32, #tpu.memory_space<vmem>>, %arg20: memref<1x4x32xf32, #tpu.memory_space<vmem>>) attributes {dimension_semantics = [], scalar_prefetch = 0 : i64, scratch_operands = 1 : i64, tpu.core_type = #tpu.core_type<tc>} {
    %c0 = arith.constant 0 : index
    %c0_0 = arith.constant 0 : index
    %c0_1 = arith.constant 0 : index
    %0 = vector.load %arg0[%c0, %c0_0, %c0_1] : memref<1x4x32xf32, #tpu.memory_space<vmem>>, vector<1x4x32xf32>
    %1 = vector.shape_cast %0 : vector<1x4x32xf32> to vector<4x32xf32>
    %c0_2 = arith.constant 0 : index
    %c0_3 = arith.constant 0 : index
    %c0_4 = arith.constant 0 : index
    %2 = vector.load %arg1[%c0_2, %c0_3, %c0_4] : memref<2x4x32xf32, #tpu.memory_space<vmem>>, vector<1x4x32xf32>
    %3 = vector.shape_cast %2 : vector<1x4x32xf32> to vector<4x32xf32>
    %c0_5 = arith.constant 0 : index
    %c0_6 = arith.constant 0 : index
    %c0_7 = arith.constant 0 : index
    %4 = vector.load %arg2[%c0_5, %c0_6, %c0_7] : memref<2x4x32xf32, #tpu.memory_space<vmem>>, vector<1x4x32xf32>
    %5 = vector.shape_cast %4 : vector<1x4x32xf32> to vector<4x32xf32>
    %c0_8 = arith.constant 0 : index
    %c0_9 = arith.constant 0 : index
    %c0_10 = arith.constant 0 : index
    %6 = vector.load %arg4[%c0_8, %c0_9, %c0_10] : memref<2x32x8xf32, #tpu.memory_space<vmem>>, vector<1x32x8xf32>
    %7 = vector.shape_cast %6 : vector<1x32x8xf32> to vector<32x8xf32>
    %cst = arith.constant dense<0.000000e+00> : vector<4x8xf32>
    %8 = tpu.matmul %1, %7, %cst {dimension_numbers = #tpu.dot_dimension_numbers<[1], [0], [0], [1], [0, 0, 1, 1], [], []>} : vector<4x32xf32>, vector<32x8xf32>, vector<4x8xf32> -> vector<4x8xf32>
    %c0_11 = arith.constant 0 : index
    %c0_12 = arith.constant 0 : index
    %c0_13 = arith.constant 0 : index
    %9 = vector.load %arg5[%c0_11, %c0_12, %c0_13] : memref<2x32x8xf32, #tpu.memory_space<vmem>>, vector<1x32x8xf32>
    %10 = vector.shape_cast %9 : vector<1x32x8xf32> to vector<32x8xf32>
    %cst_14 = arith.constant dense<0.000000e+00> : vector<4x8xf32>
    %11 = tpu.matmul %3, %10, %cst_14 {dimension_numbers = #tpu.dot_dimension_numbers<[1], [0], [0], [1], [0, 0, 1, 1], [], []>} : vector<4x32xf32>, vector<32x8xf32>, vector<4x8xf32> -> vector<4x8xf32>
    %12 = arith.addf %8, %11 : vector<4x8xf32>
    %c0_15 = arith.constant 0 : index
    %c0_16 = arith.constant 0 : index
    %c0_17 = arith.constant 0 : index
    %13 = vector.load %arg6[%c0_15, %c0_16, %c0_17] : memref<2x32x8xf32, #tpu.memory_space<vmem>>, vector<1x32x8xf32>
    %14 = vector.shape_cast %13 : vector<1x32x8xf32> to vector<32x8xf32>
    %cst_18 = arith.constant dense<0.000000e+00> : vector<4x8xf32>
    %15 = tpu.matmul %5, %14, %cst_18 {dimension_numbers = #tpu.dot_dimension_numbers<[1], [0], [0], [1], [0, 0, 1, 1], [], []>} : vector<4x32xf32>, vector<32x8xf32>, vector<4x8xf32> -> vector<4x8xf32>
    %16 = arith.addf %12, %15 : vector<4x8xf32>
    %c0_19 = arith.constant 0 : index
    %c0_20 = arith.constant 0 : index
    %c0_21 = arith.constant 0 : index
    %17 = vector.load %arg7[%c0_19, %c0_20, %c0_21] : memref<2x1x8xf32, #tpu.memory_space<vmem>>, vector<1x1x8xf32>
    %18 = vector.shape_cast %17 : vector<1x1x8xf32> to vector<1x8xf32>
    %19 = vector.broadcast %18 : vector<1x8xf32> to vector<4x8xf32>
    %20 = arith.addf %16, %19 : vector<4x8xf32>
    %cst_22 = arith.constant dense<0xFF800000> : vector<4xf32>
    %21 = vector.multi_reduction <maximumf>, %20, %cst_22 [1] : vector<4x8xf32> to vector<4xf32>
    %22 = vector.shape_cast %21 : vector<4xf32> to vector<4x1xf32>
    %23 = vector.broadcast %22 : vector<4x1xf32> to vector<4x8xf32>
    %24 = arith.subf %20, %23 : vector<4x8xf32>
    %25 = math.exp %24 : vector<4x8xf32>
    %cst_23 = arith.constant dense<0.000000e+00> : vector<4xf32>
    %26 = vector.multi_reduction <add>, %25, %cst_23 [1] : vector<4x8xf32> to vector<4xf32>
    %27 = vector.shape_cast %26 : vector<4xf32> to vector<4x1xf32>
    %28 = tpu.reciprocal %27 : vector<4x1xf32> -> vector<4x1xf32>
    %29 = vector.broadcast %28 : vector<4x1xf32> to vector<4x8xf32>
    %30 = arith.mulf %25, %29 : vector<4x8xf32>
    %c0_24 = arith.constant 0 : index
    %c0_25 = arith.constant 0 : index
    %c0_26 = arith.constant 0 : index
    %31 = vector.load %arg19[%c0_24, %c0_25, %c0_26] : memref<2x4x8xf32, #tpu.memory_space<vmem>>, vector<1x4x8xf32>
    %32 = vector.shape_cast %31 : vector<1x4x8xf32> to vector<4x8xf32>
    %33 = vector.shape_cast %30 : vector<4x8xf32> to vector<1x4x8xf32>
    tpu.vector_store %arg19[%c0_24, %c0_25, %c0_26], %33 {strides = array<i32>} : memref<2x4x8xf32, #tpu.memory_space<vmem>>, vector<1x4x8xf32>,
    %34 = vector.shape_cast %30 : vector<4x8xf32> to vector<4x8x1xf32>
    %c0_27 = arith.constant 0 : index
    %c0_28 = arith.constant 0 : index
    %c0_29 = arith.constant 0 : index
    %c0_30 = arith.constant 0 : index
    %35 = vector.load %arg3[%c0_27, %c0_28, %c0_29, %c0_30] : memref<2x4x8x32xf32, #tpu.memory_space<vmem>>, vector<1x4x8x32xf32>
    %36 = vector.shape_cast %35 : vector<1x4x8x32xf32> to vector<4x8x32xf32>
    %37 = vector.broadcast %34 : vector<4x8x1xf32> to vector<4x8x32xf32>
    %38 = arith.mulf %37, %36 : vector<4x8x32xf32>
    %cst_31 = arith.constant dense<0.000000e+00> : vector<4x32xf32>
    %39 = vector.multi_reduction <add>, %38, %cst_31 [1] : vector<4x8x32xf32> to vector<4x32xf32>
    %c0_32 = arith.constant 0 : index
    %c0_33 = arith.constant 0 : index
    %c0_34 = arith.constant 0 : index
    %40 = vector.load %arg9[%c0_32, %c0_33, %c0_34] : memref<2x32x32xf32, #tpu.memory_space<vmem>>, vector<1x32x32xf32>
    %41 = vector.shape_cast %40 : vector<1x32x32xf32> to vector<32x32xf32>
    %cst_35 = arith.constant dense<0.000000e+00> : vector<4x32xf32>
    %42 = tpu.matmul %39, %41, %cst_35 {dimension_numbers = #tpu.dot_dimension_numbers<[1], [0], [0], [1], [0, 0, 1, 1], [], []>} : vector<4x32xf32>, vector<32x32xf32>, vector<4x32xf32> -> vector<4x32xf32>
    %c0_36 = arith.constant 0 : index
    %c0_37 = arith.constant 0 : index
    %c0_38 = arith.constant 0 : index
    %43 = vector.load %arg10[%c0_36, %c0_37, %c0_38] : memref<2x1x32xf32, #tpu.memory_space<vmem>>, vector<1x1x32xf32>
    %44 = vector.shape_cast %43 : vector<1x1x32xf32> to vector<1x32xf32>
    %45 = vector.broadcast %44 : vector<1x32xf32> to vector<4x32xf32>
    %46 = arith.addf %42, %45 : vector<4x32xf32>
    %c0_39 = arith.constant 0 : index
    %c0_40 = arith.constant 0 : index
    %c0_41 = arith.constant 0 : index
    %47 = vector.load %arg8[%c0_39, %c0_40, %c0_41] : memref<2x32x32xf32, #tpu.memory_space<vmem>>, vector<1x32x32xf32>
    %48 = vector.shape_cast %47 : vector<1x32x32xf32> to vector<32x32xf32>
    %cst_42 = arith.constant dense<0.000000e+00> : vector<4x32xf32>
    %49 = tpu.matmul %3, %48, %cst_42 {dimension_numbers = #tpu.dot_dimension_numbers<[1], [0], [0], [1], [0, 0, 1, 1], [], []>} : vector<4x32xf32>, vector<32x32xf32>, vector<4x32xf32> -> vector<4x32xf32>
    %50 = arith.addf %49, %46 : vector<4x32xf32>
    %c0_43 = arith.constant 0 : index
    %c0_44 = arith.constant 0 : index
    %c0_45 = arith.constant 0 : index
    %51 = vector.load %arg8[%c0_43, %c0_44, %c0_45] : memref<2x32x32xf32, #tpu.memory_space<vmem>>, vector<1x32x32xf32>
    %52 = vector.shape_cast %51 : vector<1x32x32xf32> to vector<32x32xf32>
    %cst_46 = arith.constant dense<0.000000e+00> : vector<4x32xf32>
    %53 = tpu.matmul %5, %52, %cst_46 {dimension_numbers = #tpu.dot_dimension_numbers<[1], [0], [0], [1], [0, 0, 1, 1], [], []>} : vector<4x32xf32>, vector<32x32xf32>, vector<4x32xf32> -> vector<4x32xf32>
    %54 = arith.addf %53, %46 : vector<4x32xf32>
    %c0_47 = arith.constant 0 : index
    %c0_48 = arith.constant 0 : index
    %c0_49 = arith.constant 0 : index
    %55 = vector.load %arg11[%c0_47, %c0_48, %c0_49] : memref<2x32x128xf32, #tpu.memory_space<vmem>>, vector<1x32x128xf32>
    %56 = vector.shape_cast %55 : vector<1x32x128xf32> to vector<32x128xf32>
    %c0_50 = arith.constant 0 : index
    %c0_51 = arith.constant 0 : index
    %c0_52 = arith.constant 0 : index
    %57 = vector.load %arg12[%c0_50, %c0_51, %c0_52] : memref<2x32x128xf32, #tpu.memory_space<vmem>>, vector<1x32x128xf32>
    %58 = vector.shape_cast %57 : vector<1x32x128xf32> to vector<32x128xf32>
    %c0_53 = arith.constant 0 : index
    %c0_54 = arith.constant 0 : index
    %c0_55 = arith.constant 0 : index
    %59 = vector.load %arg13[%c0_53, %c0_54, %c0_55] : memref<2x1x128xf32, #tpu.memory_space<vmem>>, vector<1x1x128xf32>
    %60 = vector.shape_cast %59 : vector<1x1x128xf32> to vector<1x128xf32>
    %c0_i32 = arith.constant 0 : i32
    %61 = arith.index_cast %c0_i32 : i32 to index
    %c0_56 = arith.constant 0 : index
    %c0_57 = arith.constant 0 : index
    %62 = vector.load %arg0[%61, %c0_56, %c0_57] : memref<1x4x32xf32, #tpu.memory_space<vmem>>, vector<1x4x32xf32>
    %63 = vector.shape_cast %62 : vector<1x4x32xf32> to vector<4x32xf32>
    %cst_58 = arith.constant dense<0.000000e+00> : vector<4x128xf32>
    %64 = tpu.matmul %63, %56, %cst_58 {dimension_numbers = #tpu.dot_dimension_numbers<[1], [0], [0], [1], [0, 0, 1, 1], [], []>} : vector<4x32xf32>, vector<32x128xf32>, vector<4x128xf32> -> vector<4x128xf32>
    %cst_59 = arith.constant dense<0.000000e+00> : vector<4x128xf32>
    %65 = tpu.matmul %50, %58, %cst_59 {dimension_numbers = #tpu.dot_dimension_numbers<[1], [0], [0], [1], [0, 0, 1, 1], [], []>} : vector<4x32xf32>, vector<32x128xf32>, vector<4x128xf32> -> vector<4x128xf32>
    %66 = arith.addf %64, %65 : vector<4x128xf32>
    %67 = vector.broadcast %60 : vector<1x128xf32> to vector<4x128xf32>
    %68 = arith.addf %66, %67 : vector<4x128xf32>
    %69 = vector.extract_strided_slice %68 {offsets = [0, 0], sizes = [4, 32], strides = [1, 1]} : vector<4x128xf32> to vector<4x32xf32>
    %70 = arith.negf %69 : vector<4x32xf32>
    %71 = math.exp %70 : vector<4x32xf32>
    %cst_60 = arith.constant 1.000000e+00 : f32
    %72 = vector.broadcast %cst_60 : f32 to vector<4x32xf32>
    %73 = arith.addf %72, %71 : vector<4x32xf32>
    %74 = arith.divf %72, %73 : vector<4x32xf32>
    %75 = vector.extract_strided_slice %68 {offsets = [0, 32], sizes = [4, 32], strides = [1, 1]} : vector<4x128xf32> to vector<4x32xf32>
    %76 = arith.negf %75 : vector<4x32xf32>
    %77 = math.exp %76 : vector<4x32xf32>
    %cst_61 = arith.constant 1.000000e+00 : f32
    %78 = vector.broadcast %cst_61 : f32 to vector<4x32xf32>
    %79 = arith.addf %78, %77 : vector<4x32xf32>
    %80 = arith.divf %78, %79 : vector<4x32xf32>
    %81 = vector.extract_strided_slice %68 {offsets = [0, 64], sizes = [4, 32], strides = [1, 1]} : vector<4x128xf32> to vector<4x32xf32>
    %82 = math.tanh %81 : vector<4x32xf32>
    %83 = vector.extract_strided_slice %68 {offsets = [0, 96], sizes = [4, 32], strides = [1, 1]} : vector<4x128xf32> to vector<4x32xf32>
    %84 = arith.negf %83 : vector<4x32xf32>
    %85 = math.exp %84 : vector<4x32xf32>
    %cst_62 = arith.constant 1.000000e+00 : f32
    %86 = vector.broadcast %cst_62 : f32 to vector<4x32xf32>
    %87 = arith.addf %86, %85 : vector<4x32xf32>
    %88 = arith.divf %86, %87 : vector<4x32xf32>
    %89 = arith.mulf %80, %54 : vector<4x32xf32>
    %90 = arith.mulf %74, %82 : vector<4x32xf32>
    %91 = arith.addf %89, %90 : vector<4x32xf32>
    %92 = math.tanh %91 : vector<4x32xf32>
    %93 = arith.mulf %88, %92 : vector<4x32xf32>
    %94 = arith.index_cast %c0_i32 : i32 to index
    %c0_63 = arith.constant 0 : index
    %c0_64 = arith.constant 0 : index
    %95 = vector.load %arg20[%94, %c0_63, %c0_64] : memref<1x4x32xf32, #tpu.memory_space<vmem>>, vector<1x4x32xf32>
    %96 = vector.shape_cast %95 : vector<1x4x32xf32> to vector<4x32xf32>
    %97 = vector.shape_cast %93 : vector<4x32xf32> to vector<1x4x32xf32>
    tpu.vector_store %arg20[%94, %c0_63, %c0_64], %97 {strides = array<i32>} : memref<1x4x32xf32, #tpu.memory_space<vmem>>, vector<1x4x32xf32>,
    %c1_i32 = arith.constant 1 : i32
    %c0_65 = arith.constant 0 : index
    %c0_66 = arith.constant 0 : index
    %c0_67 = arith.constant 0 : index
    %98 = vector.load %arg17[%c0_65, %c0_66, %c0_67] : memref<2x4x32xf32, #tpu.memory_space<vmem>>, vector<1x4x32xf32>
    %99 = vector.shape_cast %98 : vector<1x4x32xf32> to vector<4x32xf32>
    %100 = vector.shape_cast %93 : vector<4x32xf32> to vector<1x4x32xf32>
    tpu.vector_store %arg17[%c0_65, %c0_66, %c0_67], %100 {strides = array<i32>} : memref<2x4x32xf32, #tpu.memory_space<vmem>>, vector<1x4x32xf32>,
    %c0_68 = arith.constant 0 : index
    %c0_69 = arith.constant 0 : index
    %c0_70 = arith.constant 0 : index
    %101 = vector.load %arg18[%c0_68, %c0_69, %c0_70] : memref<2x4x32xf32, #tpu.memory_space<vmem>>, vector<1x4x32xf32>
    %102 = vector.shape_cast %101 : vector<1x4x32xf32> to vector<4x32xf32>
    %103 = vector.shape_cast %91 : vector<4x32xf32> to vector<1x4x32xf32>
    tpu.vector_store %arg18[%c0_68, %c0_69, %c0_70], %103 {strides = array<i32>} : memref<2x4x32xf32, #tpu.memory_space<vmem>>, vector<1x4x32xf32>,
    %c1 = arith.constant 1 : index
    %c0_71 = arith.constant 0 : index
    %c0_72 = arith.constant 0 : index
    %104 = vector.load %arg1[%c1, %c0_71, %c0_72] : memref<2x4x32xf32, #tpu.memory_space<vmem>>, vector<1x4x32xf32>
    %105 = vector.shape_cast %104 : vector<1x4x32xf32> to vector<4x32xf32>
    %c1_73 = arith.constant 1 : index
    %c0_74 = arith.constant 0 : index
    %c0_75 = arith.constant 0 : index
    %106 = vector.load %arg2[%c1_73, %c0_74, %c0_75] : memref<2x4x32xf32, #tpu.memory_space<vmem>>, vector<1x4x32xf32>
    %107 = vector.shape_cast %106 : vector<1x4x32xf32> to vector<4x32xf32>
    %c1_76 = arith.constant 1 : index
    %c0_77 = arith.constant 0 : index
    %c0_78 = arith.constant 0 : index
    %108 = vector.load %arg4[%c1_76, %c0_77, %c0_78] : memref<2x32x8xf32, #tpu.memory_space<vmem>>, vector<1x32x8xf32>
    %109 = vector.shape_cast %108 : vector<1x32x8xf32> to vector<32x8xf32>
    %cst_79 = arith.constant dense<0.000000e+00> : vector<4x8xf32>
    %110 = tpu.matmul %1, %109, %cst_79 {dimension_numbers = #tpu.dot_dimension_numbers<[1], [0], [0], [1], [0, 0, 1, 1], [], []>} : vector<4x32xf32>, vector<32x8xf32>, vector<4x8xf32> -> vector<4x8xf32>
    %c1_80 = arith.constant 1 : index
    %c0_81 = arith.constant 0 : index
    %c0_82 = arith.constant 0 : index
    %111 = vector.load %arg5[%c1_80, %c0_81, %c0_82] : memref<2x32x8xf32, #tpu.memory_space<vmem>>, vector<1x32x8xf32>
    %112 = vector.shape_cast %111 : vector<1x32x8xf32> to vector<32x8xf32>
    %cst_83 = arith.constant dense<0.000000e+00> : vector<4x8xf32>
    %113 = tpu.matmul %105, %112, %cst_83 {dimension_numbers = #tpu.dot_dimension_numbers<[1], [0], [0], [1], [0, 0, 1, 1], [], []>} : vector<4x32xf32>, vector<32x8xf32>, vector<4x8xf32> -> vector<4x8xf32>
    %114 = arith.addf %110, %113 : vector<4x8xf32>
    %c1_84 = arith.constant 1 : index
    %c0_85 = arith.constant 0 : index
    %c0_86 = arith.constant 0 : index
    %115 = vector.load %arg6[%c1_84, %c0_85, %c0_86] : memref<2x32x8xf32, #tpu.memory_space<vmem>>, vector<1x32x8xf32>
    %116 = vector.shape_cast %115 : vector<1x32x8xf32> to vector<32x8xf32>
    %cst_87 = arith.constant dense<0.000000e+00> : vector<4x8xf32>
    %117 = tpu.matmul %107, %116, %cst_87 {dimension_numbers = #tpu.dot_dimension_numbers<[1], [0], [0], [1], [0, 0, 1, 1], [], []>} : vector<4x32xf32>, vector<32x8xf32>, vector<4x8xf32> -> vector<4x8xf32>
    %118 = arith.addf %114, %117 : vector<4x8xf32>
    %c1_88 = arith.constant 1 : index
    %c0_89 = arith.constant 0 : index
    %c0_90 = arith.constant 0 : index
    %119 = vector.load %arg7[%c1_88, %c0_89, %c0_90] : memref<2x1x8xf32, #tpu.memory_space<vmem>>, vector<1x1x8xf32>
    %120 = vector.shape_cast %119 : vector<1x1x8xf32> to vector<1x8xf32>
    %121 = vector.broadcast %120 : vector<1x8xf32> to vector<4x8xf32>
    %122 = arith.addf %118, %121 : vector<4x8xf32>
    %cst_91 = arith.constant dense<0xFF800000> : vector<4xf32>
    %123 = vector.multi_reduction <maximumf>, %122, %cst_91 [1] : vector<4x8xf32> to vector<4xf32>
    %124 = vector.shape_cast %123 : vector<4xf32> to vector<4x1xf32>
    %125 = vector.broadcast %124 : vector<4x1xf32> to vector<4x8xf32>
    %126 = arith.subf %122, %125 : vector<4x8xf32>
    %127 = math.exp %126 : vector<4x8xf32>
    %cst_92 = arith.constant dense<0.000000e+00> : vector<4xf32>
    %128 = vector.multi_reduction <add>, %127, %cst_92 [1] : vector<4x8xf32> to vector<4xf32>
    %129 = vector.shape_cast %128 : vector<4xf32> to vector<4x1xf32>
    %130 = tpu.reciprocal %129 : vector<4x1xf32> -> vector<4x1xf32>
    %131 = vector.broadcast %130 : vector<4x1xf32> to vector<4x8xf32>
    %132 = arith.mulf %127, %131 : vector<4x8xf32>
    %c1_93 = arith.constant 1 : index
    %c0_94 = arith.constant 0 : index
    %c0_95 = arith.constant 0 : index
    %133 = vector.load %arg19[%c1_93, %c0_94, %c0_95] : memref<2x4x8xf32, #tpu.memory_space<vmem>>, vector<1x4x8xf32>
    %134 = vector.shape_cast %133 : vector<1x4x8xf32> to vector<4x8xf32>
    %135 = vector.shape_cast %132 : vector<4x8xf32> to vector<1x4x8xf32>
    tpu.vector_store %arg19[%c1_93, %c0_94, %c0_95], %135 {strides = array<i32>} : memref<2x4x8xf32, #tpu.memory_space<vmem>>, vector<1x4x8xf32>,
    %136 = vector.shape_cast %132 : vector<4x8xf32> to vector<4x8x1xf32>
    %c1_96 = arith.constant 1 : index
    %c0_97 = arith.constant 0 : index
    %c0_98 = arith.constant 0 : index
    %c0_99 = arith.constant 0 : index
    %137 = vector.load %arg3[%c1_96, %c0_97, %c0_98, %c0_99] : memref<2x4x8x32xf32, #tpu.memory_space<vmem>>, vector<1x4x8x32xf32>
    %138 = vector.shape_cast %137 : vector<1x4x8x32xf32> to vector<4x8x32xf32>
    %139 = vector.broadcast %136 : vector<4x8x1xf32> to vector<4x8x32xf32>
    %140 = arith.mulf %139, %138 : vector<4x8x32xf32>
    %cst_100 = arith.constant dense<0.000000e+00> : vector<4x32xf32>
    %141 = vector.multi_reduction <add>, %140, %cst_100 [1] : vector<4x8x32xf32> to vector<4x32xf32>
    %c1_101 = arith.constant 1 : index
    %c0_102 = arith.constant 0 : index
    %c0_103 = arith.constant 0 : index
    %142 = vector.load %arg9[%c1_101, %c0_102, %c0_103] : memref<2x32x32xf32, #tpu.memory_space<vmem>>, vector<1x32x32xf32>
    %143 = vector.shape_cast %142 : vector<1x32x32xf32> to vector<32x32xf32>
    %cst_104 = arith.constant dense<0.000000e+00> : vector<4x32xf32>
    %144 = tpu.matmul %141, %143, %cst_104 {dimension_numbers = #tpu.dot_dimension_numbers<[1], [0], [0], [1], [0, 0, 1, 1], [], []>} : vector<4x32xf32>, vector<32x32xf32>, vector<4x32xf32> -> vector<4x32xf32>
    %c1_105 = arith.constant 1 : index
    %c0_106 = arith.constant 0 : index
    %c0_107 = arith.constant 0 : index
    %145 = vector.load %arg10[%c1_105, %c0_106, %c0_107] : memref<2x1x32xf32, #tpu.memory_space<vmem>>, vector<1x1x32xf32>
    %146 = vector.shape_cast %145 : vector<1x1x32xf32> to vector<1x32xf32>
    %147 = vector.broadcast %146 : vector<1x32xf32> to vector<4x32xf32>
    %148 = arith.addf %144, %147 : vector<4x32xf32>
    %c1_108 = arith.constant 1 : index
    %c0_109 = arith.constant 0 : index
    %c0_110 = arith.constant 0 : index
    %149 = vector.load %arg8[%c1_108, %c0_109, %c0_110] : memref<2x32x32xf32, #tpu.memory_space<vmem>>, vector<1x32x32xf32>
    %150 = vector.shape_cast %149 : vector<1x32x32xf32> to vector<32x32xf32>
    %cst_111 = arith.constant dense<0.000000e+00> : vector<4x32xf32>
    %151 = tpu.matmul %105, %150, %cst_111 {dimension_numbers = #tpu.dot_dimension_numbers<[1], [0], [0], [1], [0, 0, 1, 1], [], []>} : vector<4x32xf32>, vector<32x32xf32>, vector<4x32xf32> -> vector<4x32xf32>
    %152 = arith.addf %151, %148 : vector<4x32xf32>
    %c1_112 = arith.constant 1 : index
    %c0_113 = arith.constant 0 : index
    %c0_114 = arith.constant 0 : index
    %153 = vector.load %arg8[%c1_112, %c0_113, %c0_114] : memref<2x32x32xf32, #tpu.memory_space<vmem>>, vector<1x32x32xf32>
    %154 = vector.shape_cast %153 : vector<1x32x32xf32> to vector<32x32xf32>
    %cst_115 = arith.constant dense<0.000000e+00> : vector<4x32xf32>
    %155 = tpu.matmul %107, %154, %cst_115 {dimension_numbers = #tpu.dot_dimension_numbers<[1], [0], [0], [1], [0, 0, 1, 1], [], []>} : vector<4x32xf32>, vector<32x32xf32>, vector<4x32xf32> -> vector<4x32xf32>
    %156 = arith.addf %155, %148 : vector<4x32xf32>
    %c1_116 = arith.constant 1 : index
    %c0_117 = arith.constant 0 : index
    %c0_118 = arith.constant 0 : index
    %157 = vector.load %arg11[%c1_116, %c0_117, %c0_118] : memref<2x32x128xf32, #tpu.memory_space<vmem>>, vector<1x32x128xf32>
    %158 = vector.shape_cast %157 : vector<1x32x128xf32> to vector<32x128xf32>
    %c1_119 = arith.constant 1 : index
    %c0_120 = arith.constant 0 : index
    %c0_121 = arith.constant 0 : index
    %159 = vector.load %arg12[%c1_119, %c0_120, %c0_121] : memref<2x32x128xf32, #tpu.memory_space<vmem>>, vector<1x32x128xf32>
    %160 = vector.shape_cast %159 : vector<1x32x128xf32> to vector<32x128xf32>
    %c1_122 = arith.constant 1 : index
    %c0_123 = arith.constant 0 : index
    %c0_124 = arith.constant 0 : index
    %161 = vector.load %arg13[%c1_122, %c0_123, %c0_124] : memref<2x1x128xf32, #tpu.memory_space<vmem>>, vector<1x1x128xf32>
    %162 = vector.shape_cast %161 : vector<1x1x128xf32> to vector<1x128xf32>
    %c0_i32_125 = arith.constant 0 : i32
    %163 = arith.index_cast %c0_i32_125 : i32 to index
    %c0_126 = arith.constant 0 : index
    %c0_127 = arith.constant 0 : index
    %164 = vector.load %arg20[%163, %c0_126, %c0_127] : memref<1x4x32xf32, #tpu.memory_space<vmem>>, vector<1x4x32xf32>
    %165 = vector.shape_cast %164 : vector<1x4x32xf32> to vector<4x32xf32>
    %cst_128 = arith.constant dense<0.000000e+00> : vector<4x128xf32>
    %166 = tpu.matmul %165, %158, %cst_128 {dimension_numbers = #tpu.dot_dimension_numbers<[1], [0], [0], [1], [0, 0, 1, 1], [], []>} : vector<4x32xf32>, vector<32x128xf32>, vector<4x128xf32> -> vector<4x128xf32>
    %cst_129 = arith.constant dense<0.000000e+00> : vector<4x128xf32>
    %167 = tpu.matmul %152, %160, %cst_129 {dimension_numbers = #tpu.dot_dimension_numbers<[1], [0], [0], [1], [0, 0, 1, 1], [], []>} : vector<4x32xf32>, vector<32x128xf32>, vector<4x128xf32> -> vector<4x128xf32>
    %168 = arith.addf %166, %167 : vector<4x128xf32>
    %169 = vector.broadcast %162 : vector<1x128xf32> to vector<4x128xf32>
    %170 = arith.addf %168, %169 : vector<4x128xf32>
    %171 = vector.extract_strided_slice %170 {offsets = [0, 0], sizes = [4, 32], strides = [1, 1]} : vector<4x128xf32> to vector<4x32xf32>
    %172 = arith.negf %171 : vector<4x32xf32>
    %173 = math.exp %172 : vector<4x32xf32>
    %cst_130 = arith.constant 1.000000e+00 : f32
    %174 = vector.broadcast %cst_130 : f32 to vector<4x32xf32>
    %175 = arith.addf %174, %173 : vector<4x32xf32>
    %176 = arith.divf %174, %175 : vector<4x32xf32>
    %177 = vector.extract_strided_slice %170 {offsets = [0, 32], sizes = [4, 32], strides = [1, 1]} : vector<4x128xf32> to vector<4x32xf32>
    %178 = arith.negf %177 : vector<4x32xf32>
    %179 = math.exp %178 : vector<4x32xf32>
    %cst_131 = arith.constant 1.000000e+00 : f32
    %180 = vector.broadcast %cst_131 : f32 to vector<4x32xf32>
    %181 = arith.addf %180, %179 : vector<4x32xf32>
    %182 = arith.divf %180, %181 : vector<4x32xf32>
    %183 = vector.extract_strided_slice %170 {offsets = [0, 64], sizes = [4, 32], strides = [1, 1]} : vector<4x128xf32> to vector<4x32xf32>
    %184 = math.tanh %183 : vector<4x32xf32>
    %185 = vector.extract_strided_slice %170 {offsets = [0, 96], sizes = [4, 32], strides = [1, 1]} : vector<4x128xf32> to vector<4x32xf32>
    %186 = arith.negf %185 : vector<4x32xf32>
    %187 = math.exp %186 : vector<4x32xf32>
    %cst_132 = arith.constant 1.000000e+00 : f32
    %188 = vector.broadcast %cst_132 : f32 to vector<4x32xf32>
    %189 = arith.addf %188, %187 : vector<4x32xf32>
    %190 = arith.divf %188, %189 : vector<4x32xf32>
    %191 = arith.mulf %182, %156 : vector<4x32xf32>
    %192 = arith.mulf %176, %184 : vector<4x32xf32>
    %193 = arith.addf %191, %192 : vector<4x32xf32>
    %194 = math.tanh %193 : vector<4x32xf32>
    %195 = arith.mulf %190, %194 : vector<4x32xf32>
    %196 = arith.index_cast %c0_i32_125 : i32 to index
    %c0_133 = arith.constant 0 : index
    %c0_134 = arith.constant 0 : index
    %197 = vector.load %arg20[%196, %c0_133, %c0_134] : memref<1x4x32xf32, #tpu.memory_space<vmem>>, vector<1x4x32xf32>
    %198 = vector.shape_cast %197 : vector<1x4x32xf32> to vector<4x32xf32>
    %199 = vector.shape_cast %195 : vector<4x32xf32> to vector<1x4x32xf32>
    tpu.vector_store %arg20[%196, %c0_133, %c0_134], %199 {strides = array<i32>} : memref<1x4x32xf32, #tpu.memory_space<vmem>>, vector<1x4x32xf32>,
    %c1_i32_135 = arith.constant 1 : i32
    %c1_136 = arith.constant 1 : index
    %c0_137 = arith.constant 0 : index
    %c0_138 = arith.constant 0 : index
    %200 = vector.load %arg17[%c1_136, %c0_137, %c0_138] : memref<2x4x32xf32, #tpu.memory_space<vmem>>, vector<1x4x32xf32>
    %201 = vector.shape_cast %200 : vector<1x4x32xf32> to vector<4x32xf32>
    %202 = vector.shape_cast %195 : vector<4x32xf32> to vector<1x4x32xf32>
    tpu.vector_store %arg17[%c1_136, %c0_137, %c0_138], %202 {strides = array<i32>} : memref<2x4x32xf32, #tpu.memory_space<vmem>>, vector<1x4x32xf32>,
    %c1_139 = arith.constant 1 : index
    %c0_140 = arith.constant 0 : index
    %c0_141 = arith.constant 0 : index
    %203 = vector.load %arg18[%c1_139, %c0_140, %c0_141] : memref<2x4x32xf32, #tpu.memory_space<vmem>>, vector<1x4x32xf32>
    %204 = vector.shape_cast %203 : vector<1x4x32xf32> to vector<4x32xf32>
    %205 = vector.shape_cast %193 : vector<4x32xf32> to vector<1x4x32xf32>
    tpu.vector_store %arg18[%c1_139, %c0_140, %c0_141], %205 {strides = array<i32>} : memref<2x4x32xf32, #tpu.memory_space<vmem>>, vector<1x4x32xf32>,
    %c0_142 = arith.constant 0 : index
    %c0_143 = arith.constant 0 : index
    %c0_144 = arith.constant 0 : index
    %206 = vector.load %arg20[%c0_142, %c0_143, %c0_144] : memref<1x4x32xf32, #tpu.memory_space<vmem>>, vector<1x4x32xf32>
    %207 = vector.shape_cast %206 : vector<1x4x32xf32> to vector<4x32xf32>
    %c0_145 = arith.constant 0 : index
    %c0_146 = arith.constant 0 : index
    %208 = vector.load %arg14[%c0_145, %c0_146] : memref<32x8xf32, #tpu.memory_space<vmem>>, vector<32x8xf32>
    %cst_147 = arith.constant dense<0.000000e+00> : vector<4x8xf32>
    %209 = tpu.matmul %207, %208, %cst_147 {dimension_numbers = #tpu.dot_dimension_numbers<[1], [0], [0], [1], [0, 0, 1, 1], [], []>} : vector<4x32xf32>, vector<32x8xf32>, vector<4x8xf32> -> vector<4x8xf32>
    %c0_148 = arith.constant 0 : index
    %c0_149 = arith.constant 0 : index
    %210 = vector.load %arg15[%c0_148, %c0_149] : memref<1x8xf32, #tpu.memory_space<vmem>>, vector<1x8xf32>
    %211 = vector.broadcast %210 : vector<1x8xf32> to vector<4x8xf32>
    %212 = arith.addf %209, %211 : vector<4x8xf32>
    %cst_150 = arith.constant 0.000000e+00 : f32
    %213 = vector.broadcast %cst_150 : f32 to vector<4x8xf32>
    %214 = arith.maximumf %212, %213 : vector<4x8xf32>
    %c0_151 = arith.constant 0 : index
    %c0_152 = arith.constant 0 : index
    %215 = vector.load %arg16[%c0_151, %c0_152] : memref<4x8xf32, #tpu.memory_space<vmem>>, vector<4x8xf32>
    tpu.vector_store %arg16[%c0_151, %c0_152], %214 {strides = array<i32>} : memref<4x8xf32, #tpu.memory_space<vmem>>, vector<4x8xf32>,
    return
  }
}

</mosaic_0001>

<bundles_post_ra>
// kernel: attn_decoder_forward.1
= control target key start
LH: loop header
LB: loop body
LE: loop exit
PB: predicated region body
PF: predicated region fallthrough
CT: control target
= control target key end

     0   :  { %s2852_s0 = inlined_call_operand.vmem [shape: f32[1,4,32], index: 0, kind: input, shape index: {}]   ;;  %s2853_s1 = inlined_call_operand.vmem [shape: f32[2,4,32], index: 1, kind: input, shape index: {}]   ;;  %s2854_s2 = inlined_call_operand.vmem [shape: f32[2,4,32], index: 2, kind: input, shape index: {}]   ;;  %s2855_s3 = inlined_call_operand.vmem [shape: f32[2,4,8,32], index: 3, kind: input, shape index: {}]   ;;  %s2856_s4 = inlined_call_operand.vmem [shape: f32[2,32,8], index: 4, kind: input, shape index: {}]   ;;  %s2857_s5 = inlined_call_operand.vmem [shape: f32[2,32,8], index: 5, kind: input, shape index: {}]   ;;  %s2858_s6 = inlined_call_operand.vmem [shape: f32[2,32,8], index: 6, kind: input, shape index: {}]   ;;  %s2859_s7 = inlined_call_operand.vmem [shape: f32[2,1,8], index: 7, kind: input, shape index: {}]   ;;  %s2860_s8 = inlined_call_operand.vmem [shape: f32[2,32,32], index: 8, kind: input, shape index: {}]   ;;  %s2861_s9 = inlined_call_operand.vmem [shape: f32[2,32,32], index: 9, kind: input, shape index: {}]   ;;  %s2862_s10 = inlined_call_operand.vmem [shape: f32[2,1,32], index: 10, kind: input, shape index: {}]   ;;  %s2863_s11 = inlined_call_operand.vmem [shape: f32[2,32,128], index: 11, kind: input, shape index: {}]   ;;  %s2864_s12 = inlined_call_operand.vmem [shape: f32[2,32,128], index: 12, kind: input, shape index: {}]   ;;  %s2865_s13 = inlined_call_operand.vmem [shape: f32[2,1,128], index: 13, kind: input, shape index: {}]   ;;  %s2866_s14 = inlined_call_operand.vmem [shape: f32[32,8], index: 14, kind: input, shape index: {}]   ;;  %s2867_s15 = inlined_call_operand.vmem [shape: f32[1,8], index: 15, kind: input, shape index: {}]   ;;  %s2868_s16 = inlined_call_operand.hbm [shape: f32[4,8], index: 16, kind: output, shape index: {0}]   ;;  %s2869_s17 = inlined_call_operand.hbm [shape: f32[2,4,32], index: 17, kind: output, shape index: {1}]   ;;  %s2870_s18 = inlined_call_operand.hbm [shape: f32[2,4,32], index: 18, kind: output, shape index: {2}]   ;;  %s2871_s19 = inlined_call_operand.vmem [shape: f32[2,4,8], index: 19, kind: output, shape index: {3}]  }
   0x1   :  { %2876 = sst [smem:[#allocation10_spill]] %s2852_s0 }
   0x2   :  { %2877 = sst [smem:[#allocation11_spill]] %s2853_s1 }
   0x3   :  { %2878 = sst [smem:[#allocation12_spill]] %s2854_s2 }
   0x4   :  { %2879 = sst [smem:[#allocation13_spill]] %s2855_s3 }
   0x5   :  { %25 = vsyncpa [#allocation4], 0  ;;  %v66_v0 = vld [vmem:[%s2857_s5] sm:$0xff]  ;;  %v67_v1 = vld [vmem:[%s2857_s5 + $0x8] sm:$0xff]  ;;  %v2265_v3 = vmov 0.0|0.0   ;;  %vm2266_vm0 = vmmov 0  }
   0x6   :  { %v62_v2 = vld [vmem:[%s2856_s4] sm:$0xff]  ;;  %2059 = vmatprep.subr.bf16.mxu0 %v2265_v3  ;;  %v2060_v4 = vpack.c.bf16 %v67_v1, %v66_v0  ;;  %2065 = vmatprep.subr.bf16.mxu1 %v2265_v3  ;;  %v63_v5 = vld [vmem:[%s2856_s4 + $0x8] sm:$0xff]  ;;  %v68_v6 = vld [vmem:[%s2857_s5 + $0x10] sm:$0xff]  ;;  %v2267_v11 = vmov 0.0  }
   0x7   :  { %v69_v7 = vld [vmem:[%s2857_s5 + $0x18] sm:$0xff]  ;;  %v2066_v8 = vpack.c.bf16 %v63_v5, %v62_v2  ;;  %v64_v9 = vld [vmem:[%s2856_s4 + $0x10] sm:$0xff]  ;;  %1880 = vmatprep.mubr.msk.f32.mxu0 %vm2266_vm0, %v2267_v11  ;;  %1891 = vmatprep.mubr.msk.f32.mxu1 %vm2266_vm0, %v2267_v11  ;;  %v217_v14 = vld [vmem:[%s2858_s6] sm:$0xff] }
   0x8   :  { %v65_v10 = vld [vmem:[%s2856_s4 + $0x18] sm:$0xff]  ;;  %2061 = vmatpush3.bf16.msra.mxu0 %v2060_v4  ;;  %v2063_v12 = vpack.c.bf16 %v69_v7, %v68_v6  ;;  %v218_v15 = vld [vmem:[%s2858_s6 + $0x8] sm:$0xff] }
   0x9   :  { %2067 = vmatpush3.bf16.msra.mxu1 %v2066_v8  ;;  %2062 = vmatprep.subr.bf16.mxu0 %v2265_v3  ;;  %v2069_v13 = vpack.c.bf16 %v65_v10, %v64_v9 }
   0xa   :  { %2068 = vmatprep.subr.bf16.mxu1 %v2265_v3 }
   0xb   :  { %26 = vsyncpa [#allocation6], 0  ;;  %s2880_s23 = sld [smem:[#allocation11_spill]]  ;;  %vm70_vm1 = vcmask 261120   ;;  %v2072_v17 = vpack.c.bf16 %v218_v15, %v217_v14  ;;  %s2881_s3 = sld [smem:[#allocation10_spill]]  ;;  %v219_v19 = vld [vmem:[%s2858_s6 + $0x10] sm:$0xff]  ;;  %v316_v40 = vlaneseq }
   0xc   :  { %2064 = vmatpush3.bf16.msra.mxu0 %v2063_v12  ;;  %v220_v20 = vld [vmem:[%s2858_s6 + $0x18] sm:$0xff]  ;;  %s2882_s20 = sld [smem:[#allocation12_spill]]  ;;  %v1726_v29 = vld [vmem:[%s2859_s7] ss:$0 sm:$0xff]  ;;  %vm303_vm2 = vcmask 60416   ;;  %v381_v50 = vld [vmem:[%s2861_s9 + $0x8] sm:$0xff] }
   0xd   :  { %2070 = vmatpush3.bf16.msra.mxu1 %v2069_v13  ;;  %2071 = vmatprep.subr.bf16.mxu0 %v2265_v3  ;;  %v2075_v21 = vpack.c.bf16 %v220_v20, %v219_v19  ;;  %v2455_v41 = vshrl.u32 %v316_v40, 7  ;;  %v380_v49 = vld [vmem:[%s2861_s9] sm:$0xff]  ;;  %v474_v55 = vld [vmem:[%s2860_s8 + $0x8] sm:$0xff]  ;;  %v382_v57 = vld [vmem:[%s2861_s9 + $0x10] sm:$0xff]  ;;  %s2883_s22 = sld [smem:[#allocation13_spill]]  ;;  %vm395_vm3 = vcmask 1041409  }
   0xe   :  { %2077 = vmatprep.subr.bf16.mxu1 %v2265_v3  ;;  %v2078_v51 = vpack.c.bf16 %v381_v50, %v380_v49  ;;  %v473_v54 = vld [vmem:[%s2860_s8] sm:$0xff]  ;;  %v383_v58 = vld [vmem:[%s2861_s9 + $0x18] sm:$0xff]  ;;  %v475_v61 = vld [vmem:[%s2860_s8 + $0x10] sm:$0xff]  ;;  %vm397_vm4 = vcmask 1042434   ;;  %vm399_vm5 = vcmask 1043459   ;;  %vm812_vm6 = vcmask 257024  }
   0xf   :  { %v332_v42 = vsub.s32 2, %v2455_v41  ;;  %v318_v43 = vsub.s32 0, %v2455_v41  ;;  %v325_v48 = vsub.s32 1, %v2455_v41  ;;  %v339_v53 = vsub.s32 3, %v2455_v41  ;;  %v476_v62 = vld [vmem:[%s2860_s8 + $0x18] sm:$0xff]  ;;  %v621_v0 = vld [vmem:[%s2864_s12] sm:$0xff] }
  0x10   :  { %v2483_v56 = vpack.c.bf16 %v474_v55, %v473_v54  ;;  %v2081_v59 = vpack.c.bf16 %v383_v58, %v382_v57  ;;  %v2502_v63 = vpack.c.bf16 %v476_v62, %v475_v61  ;;  %v622_v1 = vld [vmem:[%s2864_s12 + $0x8] sm:$0xff]  ;;  %v617_v55 = vld [vmem:[%s2863_s11] sm:$0xff]  ;;  %v619_v61 = vld [vmem:[%s2863_s11 + $0x10] sm:$0xff] }
  0x11   :  { %v2416_v16 = vld [vmem:[%s2880_s23] sm:$0xf]  ;;  %v2096_v2 = vpack.c.bf16 %v622_v1, %v621_v0  ;;  %v618_v57 = vld [vmem:[%s2863_s11 + $0x8] sm:$0xff] }
  0x12   :  { %v2422_v18 = vld [vmem:[%s2881_s3] sm:$0xf]  ;;  %1881 = vmatmul.mubr.msk.f32.vlgmr.msra.gmra.mrb[0].mxu0 %vm70_vm1, %v2416_v16  ;;  %v2102_v58 = vpack.c.bf16 %v618_v57, %v617_v55 }
  0x13   :  { %1892 = vmatmul.mubr.msk.f32.vlgmr.msra.gmra.mrb[0].mxu1 %vm70_vm1, %v2422_v18  ;;  %2073 = vmatpush3.bf16.msra.mxu0 %v2072_v17  ;;  %v2443_v22 = vld [vmem:[%s2882_s20] sm:$0xf]  ;;  %v346_v4 = vld [vmem:[%s2883_s22 + $0x10] sm:$0xff]  ;;  %v345_v10 = vld [vmem:[%s2883_s22 + $0x8] sm:$0xff] }
  0x14   :  { %2074 = vmatprep.subr.bf16.mxu0 %v2265_v3  ;;  %1902 = vmatprep.mubr.msk.f32.mxu0 %vm2266_vm0, %v2267_v11  ;;  %v344_v5 = vld [vmem:[%s2883_s22] sm:$0xff] }
  0x15   :  { %1913 = vmatprep.mubr.msk.f32.mxu1 %vm2266_vm0, %v2267_v11  ;;  %2079 = vmatpush3.bf16.msra.mxu1 %v2078_v51  ;;  %v1737_v1 = vld [vmem:[%s2856_s4 + $0x20] sm:$0xff] }
  0x16   :  { %2080 = vmatprep.subr.bf16.mxu1 %v2265_v3 }
  0x17   :  { %2076 = vmatpush3.bf16.msra.mxu0 %v2075_v21  ;;  %v347_v21 = vld [vmem:[%s2883_s22 + $0x18] sm:$0xff] }
  0x18   :  { %2083 = vmatprep.subr.bf16.mxu0 %v2265_v3 }
  0x19   :  { %2082 = vmatpush3.bf16.msra.mxu1 %v2081_v59  ;;  %v624_v59 = vld [vmem:[%s2864_s12 + $0x18] sm:$0xff] }
  0x1a   :  { %1903 = vmatmul.mubr.msk.f32.vlgmr.msra.gmra.mrb[2].mxu0 %vm70_vm1, %v2443_v22  ;;  %2089 = vmatprep.subr.bf16.mxu1 %v2265_v3 }
  0x1b   :  { %1924 = vmatprep.mubr.msk.f32.mxu0 %vm2266_vm0, %v2267_v11  ;;  %2085 = vmatpush3.bf16.msra.mxu0 %v2483_v56 }
  0x1c   :  { %2086 = vmatprep.subr.bf16.mxu0 %v2265_v3 }
  0x1f   :  { %2088 = vmatpush3.bf16.msra.mxu0 %v2502_v63 }
  0x20   :  { %2095 = vmatprep.subr.bf16.mxu0 %v2265_v3 }
  0x22   :  { %1925 = vmatmul.mubr.msk.f32.vlgmr.msra.gmra.mrb[4].mxu0 %vm70_vm1, %v2416_v16 }
  0x23   :  { %1946 = vmatprep.mubr.msk.f32.mxu0 %vm2266_vm0, %v2267_v11  ;;  %2097 = vmatpush3.bf16.msra.mxu0 %v2096_v2  ;;  %v1738_v2 = vld [vmem:[%s2856_s4 + $0x28] sm:$0xff] }
  0x24   :  { %2098 = vmatprep.subr.bf16.mxu0 %v2265_v3 }
  0xe5   :  { %v140_v23 = vpop.f32.mrb[0].mxu0 }
  0xe6   :  { %v1882_v24 = vpop.f32.mrb[1].mxu0  ;;  %v213_v25 = vpop.f32.mrb[0].mxu1 }
  0xe7   :  { %v214_v26 = vadd.f32 %v213_v25, %v140_v23  ;;  %v1893_v27 = vpop.f32.mrb[1].mxu1 }
  0xed   :  { %v290_v28 = vpop.f32.mrb[2].mxu0 }
  0xee   :  { %v294_v30 = vadd.f32 %v290_v28, %v214_v26  ;;  %v1904_v31 = vpop.f32.mrb[3].mxu0 }
  0xf0   :  { %v302_v32 = vadd.f32 %v1726_v29, %v294_v30 }
  0xf2   :  { %v304_v33 = vsel %vm303_vm2, %v302_v32, -inf }
  0xf3   :  { %305 = vmax.xlane.f32.xlu0 %v304_v33 }
  0xf5   :  { %v543_v62 = vpop.f32.mrb[4].mxu0 }
  0xf6   :  { %v1926_v0 = vpop.f32.mrb[5].mxu0 }
 0x180   :  { %v306_v34 = vpop.xlane.xlu0 %305 }
 0x181   :  { %v307_v35 = vsub.f32 %v302_v32, %v306_v34 }
 0x183   :  { %v308_v36 = vmul.f32 1.442695, %v307_v35 }
 0x185   :  { %2171 = vpow2.f32 %v308_v36 }
 0x18f   :  { %v2172_v37 = vpop.eup %2171 }
 0x190   :  { %v310_v38 = vsel %vm303_vm2, %v2172_v37, 0.0 }
 0x191   :  { %311 = vadd.xlane.f32.xlu0 %v310_v38 }
 0x21e   :  { %v312_v39 = vpop.xlane.xlu0 %311 }
 0x21f   :  { %2173 = vrcp.f32 %v312_v39 }
 0x229   :  { %v2174_v44 = vpop.eup %2173 }
 0x22a   :  { %v314_v45 = vmul.f32 %v2174_v44, %v2172_v37 }
 0x22c   :  { %315 = vst.msk [vmem:[%s2871_s19] sm:$0xf] %vm303_vm2, %v314_v45  ;;  %v333_v46 = vrot.slane %v314_v45, %v332_v42  ;;  %v319_v47 = vrot.slane %v314_v45, %v318_v43  ;;  %v326_v52 = vrot.slane %v314_v45, %v325_v48  ;;  %v340_v60 = vrot.slane %v314_v45, %v339_v53 }
 0x22e   :  { %335 = vbcast.lane.b32.xlu0 %v333_v46, 256  ;;  %321 = vbcast.lane.b32.xlu1 %v319_v47, 256 }
 0x232   :  { %328 = vbcast.lane.b32.xlu1 %v326_v52, 256 }
 0x236   :  { %342 = vbcast.lane.b32.xlu1 %v340_v60, 256 }
 0x2a0   :  { %v336_v6 = vpop.permute.xlu0 %335  ;;  %v322_v7 = vpop.permute.xlu1 %321 }
 0x2a1   :  { %v350_v8 = vmul.f32 %v346_v4, %v336_v6  ;;  %v348_v9 = vmul.f32 %v344_v5, %v322_v7  ;;  %v626_v4 = vld [vmem:[%s2881_s3] sm:$0xf]  ;;  %v2114_v5 = vpack.c.bf16 %v1738_v2, %v1737_v1  ;;  %v1739_v6 = vld [vmem:[%s2856_s4 + $0x30] sm:$0xff]  ;;  %v1740_v7 = vld [vmem:[%s2856_s4 + $0x38] sm:$0xff] }
 0x2a2   :  { %v1759_v1 = vld [vmem:[%s2861_s9 + $0x20] sm:$0xff]  ;;  %v1760_v2 = vld [vmem:[%s2861_s9 + $0x28] sm:$0xff] }
 0x2a3   :  { %v366_v12 = vsel %vm70_vm1, %v350_v8, 0.0  ;;  %v352_v13 = vsel %vm70_vm1, %v348_v9, 0.0  ;;  %v2117_v8 = vpack.c.bf16 %v1740_v7, %v1739_v6  ;;  %v1727_v9 = vld [vmem:[%s2862_s10] ss:$0 sm:$0xff]  ;;  %v1761_v7 = vld [vmem:[%s2861_s9 + $0x30] sm:$0xff] }
 0x2a4   :  { %v367_v14 = vrot.slane %v366_v12, 4  ;;  %v353_v15 = vrot.slane %v352_v13, 4  ;;  %v329_v16 = vpop.permute.xlu1 %328 }
 0x2a5   :  { %v349_v17 = vmul.f32 %v345_v10, %v329_v16  ;;  %v1741_v10 = vld [vmem:[%s2857_s5 + $0x20] sm:$0xff] }
 0x2a6   :  { %v368_v19 = vadd.f32 %v367_v14, %v366_v12  ;;  %v354_v20 = vadd.f32 %v353_v15, %v352_v13  ;;  %v1742_v12 = vld [vmem:[%s2857_s5 + $0x28] sm:$0xff] }
 0x2a7   :  { %v359_v23 = vsel %vm70_vm1, %v349_v17, 0.0  ;;  %v2108_v16 = vpack.c.bf16 %v1742_v12, %v1741_v10  ;;  %v1743_v17 = vld [vmem:[%s2857_s5 + $0x30] sm:$0xff]  ;;  %v1769_v12 = vld [vmem:[%s2860_s8 + $0x38] sm:$0xff] }
 0x2a8   :  { %v355_v24 = vrot.slane %v354_v20, 2  ;;  %v360_v25 = vrot.slane %v359_v23, 4  ;;  %v343_v26 = vpop.permute.xlu1 %342  ;;  %v369_v27 = vrot.slane %v368_v19, 2  ;;  %v1768_v10 = vld [vmem:[%s2860_s8 + $0x30] sm:$0xff] }
 0x2a9   :  { %v351_v28 = vmul.f32 %v347_v21, %v343_v26  ;;  %v1747_v21 = vld [vmem:[%s2858_s6 + $0x20] sm:$0xff] }
 0x2aa   :  { %v356_v29 = vadd.f32 %v355_v24, %v354_v20  ;;  %v361_v30 = vadd.f32 %v360_v25, %v359_v23  ;;  %v370_v34 = vadd.f32 %v369_v27, %v368_v19  ;;  %v1744_v19 = vld [vmem:[%s2857_s5 + $0x38] sm:$0xff]  ;;  %v1748_v23 = vld [vmem:[%s2858_s6 + $0x28] sm:$0xff]  ;;  %v2623_v27 = vld [vmem:[%s2880_s23 + $0x4] sm:$0xf] }
 0x2ab   :  { %v373_v31 = vsel %vm70_vm1, %v351_v28, 0.0  ;;  %v2111_v20 = vpack.c.bf16 %v1744_v19, %v1743_v17  ;;  %v2120_v28 = vpack.c.bf16 %v1748_v23, %v1747_v21  ;;  %v1757_v23 = vld [vmem:[%s2883_s22 + $0x30] sm:$0xff] }
 0x2ac   :  { %v362_v32 = vrot.slane %v361_v30, 2  ;;  %v374_v33 = vrot.slane %v373_v31, 4  ;;  %v357_v35 = vrot.slane %v356_v29, 1  ;;  %v371_v40 = vrot.slane %v370_v34, 1 }
 0x2ae   :  { %v363_v36 = vadd.f32 %v362_v32, %v361_v30  ;;  %v375_v37 = vadd.f32 %v374_v33, %v373_v31  ;;  %v358_v44 = vadd.f32 %v357_v35, %v356_v29  ;;  %v372_v50 = vadd.f32 %v371_v40, %v370_v34  ;;  %v1749_v29 = vld [vmem:[%s2858_s6 + $0x30] sm:$0xff]  ;;  %v1750_v30 = vld [vmem:[%s2858_s6 + $0x38] sm:$0xff]  ;;  %v2640_v32 = vld [vmem:[%s2882_s20 + $0x4] sm:$0xf] }
 0x2af   :  { %v2123_v31 = vpack.c.bf16 %v1750_v30, %v1749_v29 }
 0x2b0   :  { %v364_v38 = vrot.slane %v363_v36, 1  ;;  %v376_v39 = vrot.slane %v375_v37, 2 }
 0x2b2   :  { %v365_v45 = vadd.f32 %v364_v38, %v363_v36  ;;  %v377_v46 = vadd.f32 %v376_v39, %v375_v37 }
 0x2b4   :  { %v378_v47 = vrot.slane %v377_v46, 1  ;;  %v396_v49 = vsel %vm395_vm3, %v365_v45, %v358_v44 }
 0x2b5   :  { %v398_v52 = vsel %vm397_vm4, %v372_v50, %v396_v49 }
 0x2b6   :  { %v379_v51 = vadd.f32 %v378_v47, %v377_v46  ;;  %v1753_v47 = vld [vmem:[%s2859_s7 + $0x1] ss:$0 sm:$0xff] }
 0x2b8   :  { %v400_v54 = vsel %vm399_vm5, %v379_v51, %v398_v52 }
 0x2b9   :  { %1914 = vmatmul.mubr.msk.f32.vlgmr.msra.gmra.mrb[2].mxu1 %vm70_vm1, %v400_v54 }
 0x2ba   :  { %2091 = vmatpush3.bf16.msra.mxu1 %v2483_v56  ;;  %1935 = vmatprep.mubr.msk.f32.mxu1 %vm2266_vm0, %v2267_v11  ;;  %v623_v56 = vld [vmem:[%s2864_s12 + $0x10] sm:$0xff] }
 0x2bb   :  { %2092 = vmatprep.subr.bf16.mxu1 %v2265_v3  ;;  %v2099_v60 = vpack.c.bf16 %v624_v59, %v623_v56 }
 0x2bd   :  { %2100 = vmatpush3.bf16.msra.mxu0 %v2099_v60  ;;  %v1733_v60 = vld [vmem:[%s2865_s13] ss:$0 sm:$0xff] }
 0x2be   :  { %2094 = vmatpush3.bf16.msra.mxu1 %v2502_v63  ;;  %2107 = vmatprep.subr.bf16.mxu0 %v2265_v3 }
 0x2bf   :  { %2101 = vmatprep.subr.bf16.mxu1 %v2265_v3 }
 0x2c1   :  { %1936 = vmatmul.mubr.msk.f32.vlgmr.msra.gmra.mrb[4].mxu1 %vm70_vm1, %v2443_v22  ;;  %v620_v22 = vld [vmem:[%s2863_s11 + $0x18] sm:$0xff] }
 0x2c2   :  { %2103 = vmatpush3.bf16.msra.mxu1 %v2102_v58  ;;  %1957 = vmatprep.mubr.msk.f32.mxu1 %vm2266_vm0, %v2267_v11  ;;  %v2105_v63 = vpack.c.bf16 %v620_v22, %v619_v61 }
 0x2c3   :  { %2104 = vmatprep.subr.bf16.mxu1 %v2265_v3 }
 0x2c6   :  { %2106 = vmatpush3.bf16.msra.mxu1 %v2105_v63 }
 0x2c7   :  { %2113 = vmatprep.subr.bf16.mxu1 %v2265_v3 }
 0x2c9   :  { %1958 = vmatmul.mubr.msk.f32.vlgmr.msra.gmra.mrb[6].mxu1 %vm70_vm1, %v626_v4  ;;  %v2126_v4 = vpack.c.bf16 %v1760_v2, %v1759_v1 }
 0x2ca   :  { %2115 = vmatpush3.bf16.msra.mxu1 %v2114_v5  ;;  %1979 = vmatprep.mubr.msk.f32.mxu1 %vm2266_vm0, %v2267_v11 }
 0x2cb   :  { %2116 = vmatprep.subr.bf16.mxu1 %v2265_v3 }
 0x2ce   :  { %2118 = vmatpush3.bf16.msra.mxu1 %v2117_v8 }
 0x2cf   :  { %2125 = vmatprep.subr.bf16.mxu1 %v2265_v3 }
 0x2d1   :  { %1980 = vmatmul.mubr.msk.f32.vlgmr.msra.gmra.mrb[8].mxu1 %vm70_vm1, %v2422_v18 }
 0x2d2   :  { %2001 = vmatprep.mubr.msk.f32.mxu1 %vm2266_vm0, %v2267_v11  ;;  %2127 = vmatpush3.bf16.msra.mxu1 %v2126_v4 }
 0x2d3   :  { %2128 = vmatprep.subr.bf16.mxu1 %v2265_v3 }
 0x38c   :  { %v469_v13 = vpop.f32.mrb[2].mxu1 }
 0x38d   :  { %v470_v14 = vadd.f32 %v1727_v9, %v469_v13  ;;  %v1915_v15 = vpop.f32.mrb[3].mxu1  ;;  %v2696_v13 = vpack.c.bf16 %v1769_v12, %v1768_v10 }
 0x38f   :  { %v544_v18 = vadd.f32 %v543_v62, %v470_v14 }
 0x391   :  { %1947 = vmatmul.mubr.msk.f32.vlgmr.msra.gmra.mrb[6].mxu0 %vm70_vm1, %v544_v18  ;;  %v1755_v18 = vld [vmem:[%s2883_s22 + $0x20] sm:$0xff] }
 0x392   :  { %2109 = vmatpush3.bf16.msra.mxu0 %v2108_v16  ;;  %1968 = vmatprep.mubr.msk.f32.mxu0 %vm2266_vm0, %v2267_v11  ;;  %v1756_v16 = vld [vmem:[%s2883_s22 + $0x28] sm:$0xff] }
 0x393   :  { %2110 = vmatprep.subr.bf16.mxu0 %v2265_v3 }
 0x394   :  { %v613_v24 = vpop.f32.mrb[4].mxu1 }
 0x395   :  { %v2618_v25 = vadd.f32 %v613_v24, %v470_v14  ;;  %v1937_v26 = vpop.f32.mrb[5].mxu1 }
 0x396   :  { %2112 = vmatpush3.bf16.msra.mxu0 %v2111_v20 }
 0x397   :  { %2119 = vmatprep.subr.bf16.mxu0 %v2265_v3 }
 0x399   :  { %1969 = vmatmul.mubr.msk.f32.vlgmr.msra.gmra.mrb[8].mxu0 %vm70_vm1, %v2623_v27 }
 0x39a   :  { %2121 = vmatpush3.bf16.msra.mxu0 %v2120_v28  ;;  %1990 = vmatprep.mubr.msk.f32.mxu0 %vm2266_vm0, %v2267_v11 }
 0x39b   :  { %2122 = vmatprep.subr.bf16.mxu0 %v2265_v3 }
 0x39c   :  { %v769_v33 = vpop.f32.mrb[6].mxu1 }
 0x39d   :  { %v1959_v34 = vpop.f32.mrb[7].mxu1 }
 0x39e   :  { %2124 = vmatpush3.bf16.msra.mxu0 %v2123_v31 }
 0x39f   :  { %2131 = vmatprep.subr.bf16.mxu0 %v2265_v3 }
 0x3a1   :  { %1991 = vmatmul.mubr.msk.f32.vlgmr.msra.gmra.mrb[10].mxu0 %vm70_vm1, %v2640_v32 }
 0x3a2   :  { %2012 = vmatprep.mubr.msk.f32.mxu0 %vm2266_vm0, %v2267_v11 }
 0x3a4   :  { %v973_v35 = vpop.f32.mrb[8].mxu1 }
 0x3a5   :  { %v1981_v36 = vpop.f32.mrb[9].mxu1 }
 0x464   :  { %v696_v37 = vpop.f32.mrb[6].mxu0 }
 0x465   :  { %v770_v38 = vadd.f32 %v769_v33, %v696_v37  ;;  %v1948_v39 = vpop.f32.mrb[7].mxu0  ;;  %v1758_v33 = vld [vmem:[%s2883_s22 + $0x38] sm:$0xff] }
 0x467   :  { %v779_v62 = vadd.f32 %v1733_v60, %v770_v38 }
 0x46c   :  { %v903_v40 = vpop.f32.mrb[8].mxu0 }
 0x46d   :  { %v1970_v44 = vpop.f32.mrb[9].mxu0  ;;  %v974_v45 = vadd.f32 %v973_v35, %v903_v40 }
 0x474   :  { %v1051_v46 = vpop.f32.mrb[10].mxu0 }
 0x475   :  { %v1055_v49 = vadd.f32 %v1051_v46, %v974_v45  ;;  %v1992_v50 = vpop.f32.mrb[11].mxu0 }
 0x477   :  { %v1064_v51 = vadd.f32 %v1753_v47, %v1055_v49 }
 0x479   :  { %v1065_v52 = vsel %vm303_vm2, %v1064_v51, -inf }
 0x47a   :  { %1066 = vmax.xlane.f32.xlu1 %v1065_v52 }
 0x507   :  { %v1067_v54 = vpop.xlane.xlu1 %1066 }
 0x508   :  { %v1068_v55 = vsub.f32 %v1064_v51, %v1067_v54 }
 0x50a   :  { %v1069_v57 = vmul.f32 1.442695, %v1068_v55 }
 0x50c   :  { %2175 = vpow2.f32 %v1069_v57 }
 0x516   :  { %v2176_v58 = vpop.eup %2175 }
 0x517   :  { %v1071_v56 = vsel %vm303_vm2, %v2176_v58, 0.0 }
 0x518   :  { %1072 = vadd.xlane.f32.xlu0 %v1071_v56  ;;  %v1776_v56 = vld [vmem:[%s2864_s12 + $0x20] sm:$0xff] }
 0x5a5   :  { %v1073_v59 = vpop.xlane.xlu0 %1072 }
 0x5a6   :  { %2177 = vrcp.f32 %v1073_v59  ;;  %v1777_v59 = vld [vmem:[%s2864_s12 + $0x28] sm:$0xff] }
 0x5a7   :  { %2179 = vtanh.f32 %v779_v62 }
 0x5b0   :  { %v2178_v61 = vpop.eup %2177 }
 0x5b1   :  { %v1075_v22 = vmul.f32 %v2178_v61, %v2176_v58  ;;  %v2180_v41 = vpop.eup %2179 }
 0x5b3   :  { %1754 = vst.msk [vmem:[%s2871_s19 + $0x4] sm:$0xf] %vm303_vm2, %v1075_v22  ;;  %v1088_v63 = vrot.slane %v1075_v22, %v325_v48  ;;  %v1081_v0 = vrot.slane %v1075_v22, %v318_v43  ;;  %v1095_v5 = vrot.slane %v1075_v22, %v332_v42  ;;  %v1766_v43 = vld [vmem:[%s2860_s8 + $0x20] sm:$0xff]  ;;  %v1767_v48 = vld [vmem:[%s2860_s8 + $0x28] sm:$0xff]  ;;  %v1762_v42 = vld [vmem:[%s2861_s9 + $0x38] sm:$0xff]  ;;  %v1102_v9 = vrot.slane %v1075_v22, %v339_v53  ;;  %s2268_s9 = smov 64  }
 0x5b4   :  { %v2678_v6 = vpack.c.bf16 %v1767_v48, %v1766_v43  ;;  %v2129_v8 = vpack.c.bf16 %v1762_v42, %v1761_v7  ;;  %s2269_s8 = smov 32   ;;  %v1734_v53 = vmul.f32 -1.442695, %v779_v62  ;;  %v2144_v22 = vpack.c.bf16 %v1777_v59, %v1776_v56  ;;  %v1778_v7 = vld [vmem:[%s2864_s12 + $0x30] sm:$0xff] }
 0x5b5   :  { %1090 = vbcast.lane.b32.xlu0 %v1088_v63, 256  ;;  %1083 = vbcast.lane.b32.xlu1 %v1081_v0, 256  ;;  %v1590_v59 = vld [vmem:[%s2866_s14 + $0x10] sm:$0xff] }
 0x5b6   :  { %2133 = vmatpush3.bf16.msra.mxu0 %v2678_v6  ;;  %2130 = vmatpush3.bf16.msra.mxu1 %v2129_v8  ;;  %2181 = vpow2.f32 %v1734_v53  ;;  %v1764_v53 = vld [vmem:[%s2862_s10 + $0x1] ss:$0 sm:$0xff] }
 0x5b7   :  { %2134 = vmatprep.subr.bf16.mxu0 %v2265_v3  ;;  %2137 = vmatprep.subr.bf16.mxu1 %v2265_v3 }
 0x5b9   :  { %1097 = vbcast.lane.b32.xlu1 %v1095_v5, 256 }
 0x5ba   :  { %2136 = vmatpush3.bf16.msra.mxu0 %v2696_v13 }
 0x5bb   :  { %2143 = vmatprep.subr.bf16.mxu0 %v2265_v3 }
 0x5bd   :  { %1104 = vbcast.lane.b32.xlu1 %v1102_v9, 256  ;;  %2013 = vmatmul.mubr.msk.f32.vlgmr.msra.gmra.mrb[12].mxu0 %vm70_vm1, %v2623_v27 }
 0x5be   :  { %2034 = vmatprep.mubr.msk.f32.mxu0 %vm2266_vm0, %v2267_v11  ;;  %2145 = vmatpush3.bf16.msra.mxu0 %v2144_v22 }
 0x5bf   :  { %2146 = vmatprep.subr.bf16.mxu0 %v2265_v3 }
 0x5c0   :  { %v2182_v14 = vpop.eup %2181 }
 0x5c1   :  { %793 = vrot.lane.b32.xlu1 %v2180_v41, %s2268_s9  ;;  %v783_v15 = vadd.f32 1.0, %v2182_v14 }
 0x5c3   :  { %2183 = vrcp.f32 %v783_v15 }
 0x5c5   :  { %788 = vrot.lane.b32.xlu1 %v2618_v25, %s2269_s8 }
 0x5cd   :  { %v2724_v47 = vpop.eup %2183 }
 0x627   :  { %v1091_v17 = vpop.permute.xlu0 %1090  ;;  %v1084_v19 = vpop.permute.xlu1 %1083 }
 0x628   :  { %v1112_v20 = vmul.f32 %v1756_v16, %v1091_v17  ;;  %v1111_v21 = vmul.f32 %v1755_v18, %v1084_v19 }
 0x62a   :  { %v1122_v24 = vsel %vm70_vm1, %v1112_v20, 0.0  ;;  %v1115_v25 = vsel %vm70_vm1, %v1111_v21, 0.0  ;;  %v1772_v21 = vld [vmem:[%s2863_s11 + $0x20] sm:$0xff] }
 0x62b   :  { %v1123_v26 = vrot.slane %v1122_v24, 4  ;;  %v1116_v27 = vrot.slane %v1115_v25, 4  ;;  %v1098_v28 = vpop.permute.xlu1 %1097 }
 0x62c   :  { %v1113_v29 = vmul.f32 %v1757_v23, %v1098_v28  ;;  %v1773_v23 = vld [vmem:[%s2863_s11 + $0x28] sm:$0xff] }
 0x62d   :  { %v1124_v30 = vadd.f32 %v1123_v26, %v1122_v24  ;;  %v1117_v31 = vadd.f32 %v1116_v27, %v1115_v25  ;;  %v2150_v24 = vpack.c.bf16 %v1773_v23, %v1772_v21  ;;  %v1774_v25 = vld [vmem:[%s2863_s11 + $0x30] sm:$0xff] }
 0x62e   :  { %v1129_v34 = vsel %vm70_vm1, %v1113_v29, 0.0 }
 0x62f   :  { %v1125_v35 = vrot.slane %v1124_v30, 2  ;;  %v1118_v36 = vrot.slane %v1117_v31, 2  ;;  %v1130_v37 = vrot.slane %v1129_v34, 4  ;;  %v1105_v38 = vpop.permute.xlu1 %1104 }
 0x630   :  { %v1114_v39 = vmul.f32 %v1758_v33, %v1105_v38 }
 0x631   :  { %v1126_v40 = vadd.f32 %v1125_v35, %v1124_v30  ;;  %v1119_v44 = vadd.f32 %v1118_v36, %v1117_v31  ;;  %v1131_v45 = vadd.f32 %v1130_v37, %v1129_v34  ;;  %v1783_v34 = vld [vmem:[%s2865_s13 + $0x1] ss:$0 sm:$0xff]  ;;  %s2270_s13 = smov 96  }
 0x632   :  { %v1136_v46 = vsel %vm70_vm1, %v1114_v39, 0.0 }
 0x633   :  { %v1132_v49 = vrot.slane %v1131_v45, 2  ;;  %v1137_v50 = vrot.slane %v1136_v46, 4  ;;  %v794_v51 = vpop.permute.xlu1 %793  ;;  %v1127_v54 = vrot.slane %v1126_v40, 1  ;;  %v1120_v55 = vrot.slane %v1119_v44, 1 }
 0x634   :  { %v796_v52 = vmul.f32 %v2724_v47, %v794_v51 }
 0x635   :  { %v1133_v57 = vadd.f32 %v1132_v49, %v1131_v45  ;;  %v1138_v58 = vadd.f32 %v1137_v50, %v1136_v46  ;;  %v1128_v62 = vadd.f32 %v1127_v54, %v1126_v40  ;;  %v1121_v63 = vadd.f32 %v1120_v55, %v1119_v44 }
 0x636   :  { %798 = vrot.lane.b32.xlu1 %v796_v52, %s2269_s8 }
 0x637   :  { %v1134_v60 = vrot.slane %v1133_v57, 1  ;;  %v1139_v61 = vrot.slane %v1138_v58, 2  ;;  %v1160_v5 = vsel %vm395_vm3, %v1128_v62, %v1121_v63  ;;  %v789_v10 = vpop.permute.xlu1 %788 }
 0x639   :  { %v1140_v0 = vadd.f32 %v1139_v61, %v1138_v58  ;;  %v1135_v1 = vadd.f32 %v1134_v60, %v1133_v57  ;;  %v1588_v57 = vld [vmem:[%s2866_s14] sm:$0xff]  ;;  %v1589_v58 = vld [vmem:[%s2866_s14 + $0x8] sm:$0xff]  ;;  %v1591_v60 = vld [vmem:[%s2866_s14 + $0x18] sm:$0xff]  ;;  %s2271_s14 = smov [#allocation5]  }
 0x63a   :  { %v2156_v56 = vpack.c.bf16 %v1589_v58, %v1588_v57  ;;  %v2159_v61 = vpack.c.bf16 %v1591_v60, %v1590_v59  ;;  %s1689_s21 = sshll.u32 %s2271_s14, 4  ;;  %s1690_s21 = int_to_ptr.vmem [resolvable:$true] %s1689_s21 }
 0x63b   :  { %v1141_v2 = vrot.slane %v1140_v0, 1  ;;  %v1161_v43 = vsel %vm397_vm4, %v1135_v1, %v1160_v5  ;;  %s2195_s4 = scalar_lea.vmem %s1690_s21, 128  ;;  %p2200_p1 = scmp.lt.s32.totalorder %s1690_s21, %s1690_s21 }
 0x63c   :  { %p2196_p0 = scmp.ne.s32.totalorder %s1690_s21, %s2195_s4  ;;  %p2201_p2 = scmp.lt.s32.totalorder %s2195_s4, %s2195_s4 }
 0x63d   :  { %v1142_v4 = vadd.f32 %v1141_v2, %v1140_v0 }
 0x63e   :  { %p2202_p3 = por %p2201_p2, %p2200_p1 }
 0x63f   :  { %v1162_v48 = vsel %vm399_vm5, %v1142_v4, %v1161_v43 }
 0x640   :  { %2002 = vmatmul.mubr.msk.f32.vlgmr.msra.gmra.mrb[10].mxu1 %vm70_vm1, %v1162_v48  ;;  %p2203_p4 = pnand %p2202_p3, %p2196_p0 }
 0x641   :  { %2139 = vmatpush3.bf16.msra.mxu1 %v2678_v6  ;;  %2023 = vmatprep.mubr.msk.f32.mxu1 %vm2266_vm0, %v2267_v11  ;;  %v1779_v6 = vld [vmem:[%s2864_s12 + $0x38] sm:$0xff] }
 0x642   :  { %2140 = vmatprep.subr.bf16.mxu1 %v2265_v3  ;;  %v2147_v42 = vpack.c.bf16 %v1779_v6, %v1778_v7 }
 0x644   :  { %2148 = vmatpush3.bf16.msra.mxu0 %v2147_v42 }
 0x645   :  { %2142 = vmatpush3.bf16.msra.mxu1 %v2696_v13  ;;  %2155 = vmatprep.subr.bf16.mxu0 %v2265_v3 }
 0x646   :  { %2149 = vmatprep.subr.bf16.mxu1 %v2265_v3 }
 0x648   :  { %2024 = vmatmul.mubr.msk.f32.vlgmr.msra.gmra.mrb[12].mxu1 %vm70_vm1, %v2640_v32  ;;  %v791_v32 = vmul.f32 %v2724_v47, %v789_v10 }
 0x649   :  { %2045 = vmatprep.mubr.msk.f32.mxu1 %vm2266_vm0, %v2267_v11  ;;  %2151 = vmatpush3.bf16.msra.mxu1 %v2150_v24 }
 0x64a   :  { %2152 = vmatprep.subr.bf16.mxu1 %v2265_v3 }
 0x690   :  { %v1306_v8 = vpop.f32.mrb[12].mxu0 }
 0x691   :  { %v2014_v9 = vpop.f32.mrb[13].mxu0 }
 0x6a8   :  { %v799_v12 = vpop.permute.xlu1 %798 }
 0x6a9   :  { %v801_v13 = vadd.f32 %v799_v12, %v791_v32 }
 0x6ab   :  { %2185 = vtanh.f32 %v801_v13 }
 0x6b5   :  { %v2186_v41 = vpop.eup %2185 }
 0x6b6   :  { %804 = vrot.lane.b32.xlu0 %v2186_v41, %s2268_s9 }
 0x713   :  { %v1231_v14 = vpop.f32.mrb[10].mxu1 }
 0x714   :  { %v1232_v15 = vadd.f32 %v1764_v53, %v1231_v14  ;;  %v2003_v16 = vpop.f32.mrb[11].mxu1 }
 0x716   :  { %v1307_v18 = vadd.f32 %v1306_v8, %v1232_v15 }
 0x718   :  { %2035 = vmatmul.mubr.msk.f32.vlgmr.msra.gmra.mrb[14].mxu0 %vm70_vm1, %v1307_v18 }
 0x719   :  { %2056 = vmatprep.mubr.msk.f32.mxu0 %vm2266_vm0, %v2267_v11  ;;  %v1775_v11 = vld [vmem:[%s2863_s11 + $0x38] sm:$0xff]  ;;  %2157 = vmatpush3.bf16.msra.mxu0 %v2156_v56 }
 0x71a   :  { %v2153_v26 = vpack.c.bf16 %v1775_v11, %v1774_v25  ;;  %2158 = vmatprep.subr.bf16.mxu0 %v2265_v3 }
 0x71b   :  { %v1376_v17 = vpop.f32.mrb[12].mxu1 }
 0x71c   :  { %v1377_v19 = vadd.f32 %v1376_v17, %v1232_v15  ;;  %v2025_v20 = vpop.f32.mrb[13].mxu1  ;;  %2154 = vmatpush3.bf16.msra.mxu1 %v2153_v26 }
 0x71d   :  { %2160 = vmatpush3.bf16.msra.mxu0 %v2159_v61 }
 0x728   :  { %v805_v27 = vpop.permute.xlu0 %804 }
 0x729   :  { %v807_v28 = vmul.f32 %v2724_v47, %v805_v27 }
 0x72b   :  { %809 = vrot.lane.b32.xlu1 %v807_v28, %s2269_s8 }
 0x72f   :  { %1554 = vrot.lane.b32.xlu1 %v1377_v19, %s2269_s8 }
 0x79d   :  { %v810_v29 = vpop.permute.xlu1 %809 }
 0x79e   :  { %813 = vst.msk [vmem:[#allocation2] sm:$0xf] %vm812_vm6, %v810_v29  ;;  %814 = vst.msk [vmem:[#allocation5] sm:$0xf] %vm812_vm6, %v810_v29 }
 0x7a1   :  { %v1555_v50 = vpop.permute.xlu1 %1554 }
 0x7a5   :  { %v1392_v30 = vld [vmem:[#allocation2] sm:$0xf] }
 0x7a6   :  { %2046 = vmatmul.mubr.msk.f32.vlgmr.msra.gmra.mrb[14].mxu1 %vm70_vm1, %v1392_v30 }
 0x7eb   :  { %v1462_v31 = vpop.f32.mrb[14].mxu0 }
 0x7ec   :  { %v2036_v33 = vpop.f32.mrb[15].mxu0 }
 0x879   :  { %v1535_v35 = vpop.f32.mrb[14].mxu1 }
 0x87a   :  { %v1536_v36 = vadd.f32 %v1535_v35, %v1462_v31  ;;  %v2047_v37 = vpop.f32.mrb[15].mxu1 }
 0x87c   :  { %v1545_v38 = vadd.f32 %v1783_v34, %v1536_v36 }
 0x87e   :  { %2187 = vtanh.f32 %v1545_v38  ;;  %v1784_v40 = vmul.f32 -1.442695, %v1545_v38 }
 0x880   :  { %2189 = vpow2.f32 %v1784_v40 }
 0x888   :  { %v2188_v39 = vpop.eup %2187 }
 0x889   :  { %1559 = vrot.lane.b32.xlu0 %v2188_v39, %s2268_s9 }
 0x88a   :  { %v2190_v44 = vpop.eup %2189 }
 0x88b   :  { %v1549_v45 = vadd.f32 1.0, %v2190_v44 }
 0x88d   :  { %2191 = vrcp.f32 %v1549_v45 }
 0x897   :  { %v2192_v46 = vpop.eup %2191 }
 0x898   :  { %v1557_v51 = vmul.f32 %v2192_v46, %v1555_v50 }
 0x8fb   :  { %v1560_v47 = vpop.permute.xlu0 %1559 }
 0x8fc   :  { %v1562_v49 = vmul.f32 %v2192_v46, %v1560_v47 }
 0x8fe   :  { %1564 = vrot.lane.b32.xlu0 %v1562_v49, %s2269_s8 }
 0x970   :  { %v1565_v52 = vpop.permute.xlu0 %1564 }
 0x971   :  { %v1567_v54 = vadd.f32 %v1565_v52, %v1557_v51 }
 0x973   :  { %2193 = vtanh.f32 %v1567_v54 }
 0x97d   :  { %v2194_v55 = vpop.eup %2193 }
 0x97e   :  { %1570 = vrot.lane.b32.xlu1 %v2194_v55, %s2268_s9 }
 0x982   :  { %816 = vrot.lane.b32.xlu1 %v801_v13, %s2270_s13 }
 0x9f0   :  { %v1571_v22 = vpop.permute.xlu1 %1570 }
 0x9f1   :  { %v1573_v62 = vmul.f32 %v2192_v46, %v1571_v22 }
 0x9f3   :  { %1575 = vrot.lane.b32.xlu0 %v1573_v62, %s2269_s8 }
 0x9f4   :  { %v817_v63 = vpop.permute.xlu1 %816 }
 0x9f5   :  { %819 = vst.msk [vmem:[#allocation7] sm:$0xf] %vm812_vm6, %v817_v63 }
 0x9f7   :  { %1582 = vrot.lane.b32.xlu0 %v1567_v54, %s2270_s13 }
 0xa65   :  { %v1576_v0 = vpop.permute.xlu0 %1575 }
 0xa66   :  { %1578 = vst.msk [vmem:[#allocation2] sm:$0xf] %vm812_vm6, %v1576_v0  ;;  %1580 = vst.msk [vmem:[#allocation5 + $0x4] sm:$0xf] %vm812_vm6, %v1576_v0 }
 0xa69   :  { %v1583_v3 = vpop.permute.xlu0 %1582 }
 0xa6a   :  { %1586 = vst.msk [vmem:[#allocation7 + $0x4] sm:$0xf] %vm812_vm6, %v1583_v3 }
 0xa6d   :  { %v1587_v1 = vld [vmem:[#allocation2] sm:$0xf] }
 0xa6e   :  { %2057 = vmatmul.mubr.msk.f32.vlgmr.msra.gmra.mrb[16].mxu0 %vm70_vm1, %v1587_v1 }
 0xa6f   :  { %2206 = shalt.err (!%p2203_p4)
}
 0xa70   :  { %s2207_s1 = scalar_lea.hbm %s2869_s17, 128 }
 0xa71   :  { %p2208_p5 = scmp.ne.s32.totalorder %s2869_s17, %s2207_s1  ;;  %p2211_p6 = scmp.lt.u32.totalorder %s2207_s1, %s2869_s17 }
 0xa73   :  { %p2213_p7 = pnand %p2211_p6, %p2208_p5 }
 0xa75   :  { %2216 = shalt.err (!%p2213_p7)
}
 0xa76   :  { %s2272_s24 = smov 4   ;;  %s2273_s25 = smov [#allocation7]  }
 0xa77   :  { %1695 = dma.vmem_to_hbm [thread:$0]  %s1690_s21, 128, %s2869_s17, [#allocation6], %s2268_s9, %s2268_s9, %s2272_s24  }
 0xa78   :  { %s1701_s26 = sshll.u32 %s2273_s25, 4  ;;  %s1702_s26 = int_to_ptr.vmem [resolvable:$true] %s1701_s26 }
 0xa79   :  { %s2217_s11 = scalar_lea.vmem %s1702_s26, 128  ;;  %p2222_p9 = scmp.lt.s32.totalorder %s1702_s26, %s1702_s26 }
 0xa7a   :  { %p2218_p8 = scmp.ne.s32.totalorder %s1702_s26, %s2217_s11  ;;  %p2223_p10 = scmp.lt.s32.totalorder %s2217_s11, %s2217_s11 }
 0xa7c   :  { %p2224_p11 = por %p2223_p10, %p2222_p9 }
 0xa7e   :  { %p2225_p12 = pnand %p2224_p11, %p2218_p8 }
 0xa80   :  { %2228 = shalt.err (!%p2225_p12)
}
 0xa81   :  { %s2229_s28 = scalar_lea.hbm %s2870_s18, 128 }
 0xa82   :  { %p2230_p13 = scmp.ne.s32.totalorder %s2870_s18, %s2229_s28  ;;  %p2233_p0 = scmp.lt.u32.totalorder %s2229_s28, %s2870_s18 }
 0xa84   :  { %p2235_p1 = pnand %p2233_p0, %p2230_p13 }
 0xa86   :  { %2238 = shalt.err (!%p2235_p1)
}
 0xa87   :  { %1707 = dma.vmem_to_hbm [thread:$0]  %s1702_s26, 128, %s2870_s18, [#allocation6], %s2268_s9, %s2268_s9, %s2272_s24  }
 0xa88   :  { %v1785_v2 = vld [vmem:[%s2867_s15] ss:$0 sm:$0xff]  ;;  %s2274_s14 = smov [#allocation3]  }
 0xa89   :  { %s1680_s21 = sshll.u32 %s2274_s14, 4  ;;  %s1681_s21 = int_to_ptr.vmem [resolvable:$true] %s1680_s21 }
 0xa8a   :  { %s2239_s4 = scalar_lea.vmem %s1681_s21, 64  ;;  %p2244_p3 = scmp.lt.s32.totalorder %s1681_s21, %s1681_s21 }
 0xa8b   :  { %p2240_p2 = scmp.ne.s32.totalorder %s1681_s21, %s2239_s4  ;;  %p2245_p4 = scmp.lt.s32.totalorder %s2239_s4, %s2239_s4 }
 0xa8d   :  { %p2246_p5 = por %p2245_p4, %p2244_p3 }
 0xa8f   :  { %p2247_p6 = pnand %p2246_p5, %p2240_p2 }
 0xb41   :  { %v1668_v4 = vpop.f32.mrb[16].mxu0 }
 0xb42   :  { %v1669_v5 = vadd.f32 %v1785_v2, %v1668_v4  ;;  %v2058_v43 = vpop.f32.mrb[17].mxu0 }
 0xb44   :  { %v1672_v48 = vmax.f32 %v1669_v5, 0.0 }
 0xb46   :  { %1673 = vst.msk [vmem:[#allocation3] sm:$0xf] %vm303_vm2, %v1672_v48 }
 0xb47   :  { %2250 = shalt.err (!%p2247_p6)
}
 0xb48   :  { %s2251_s15 = scalar_lea.hbm %s2868_s16, 64 }
 0xb49   :  { %p2252_p7 = scmp.ne.s32.totalorder %s2868_s16, %s2251_s15  ;;  %p2255_p8 = scmp.lt.u32.totalorder %s2251_s15, %s2868_s16 }
 0xb4b   :  { %p2257_p9 = pnand %p2255_p8, %p2252_p7 }
 0xb4d   :  { %2260 = shalt.err (!%p2257_p9)
}
 0xb4e   :  { %1683 = dma.vmem_to_hbm [thread:$0]  %s1681_s21, 64, %s2868_s16, [#allocation4]  }
 0xb4f   :  { %2261 = dma.done.wait [#allocation4], 64  }
 0xb50   :  { %2262 = vsyncadd [#allocation4], 4294967232 }
 0xb51   :  { %2263 = dma.done.wait [#allocation6], 256  }
 0xb52   :  { %2264 = vsyncadd [#allocation6], 4294967040 }
 0xb53   :  { %1721 = vsyncpa [#allocation4], 1 }
 0xb54   :  { %1722 = vsyncpa [#allocation6], 1 }

</bundles_post_ra>
